<compile_context>
chip_gen: v5e
topology: v5e:2x2
jax: 0.10.0
libtpu: 0.0.40
codegen_flags: <defaults>
</compile_context>

<pallas_src>
import functools

import jax
import jax.numpy as jnp
from jax.experimental import pallas as pl
from jax.experimental.pallas import tpu as pltpu


def _apply_act(x, activation):
    if activation == "tanh":
        return jnp.tanh(x)
    elif activation == "relu":
        return jnp.maximum(x, 0.0)
    else:
        return x


def tastenet_kernel(z_ref, *refs, activation, transform, n_layers,
                    compute_dtype):
    """Full MLP forward for one batch tile, entirely in VMEM.

    refs = (W1^T, b1, W2^T, b2, ..., Wn^T, bn, out_ref)
    z_ref:   (tile_N, D)      -- batch rows (contiguous HBM DMA)
    Wi^T:    (in_i, out_i)    -- pre-transposed nn.Linear weight
    bi:      (1, out_i)       -- broadcast across the batch (sublane) axis
    out_ref: (tile_N, out_last)
    """
    out_ref = refs[-1]
    param_refs = refs[:-1]

    h = z_ref[...]
    for i in range(n_layers):
        wt = param_refs[2 * i][...].astype(compute_dtype)      # (in_i, out_i)
        b = param_refs[2 * i + 1][...].astype(jnp.float32)     # (1, out_i)
        # bf16 x bf16 on the MXU, f32 accumulation; bias add in f32.
        h = jnp.dot(h.astype(compute_dtype), wt,
                    preferred_element_type=jnp.float32) + b    # (tile_N, out_i)
        if i < n_layers - 1:
            h = _apply_act(h, activation)

    if transform == "exp":
        h = -jnp.exp(-h)                  # EUP
    elif transform == "relu":
        h = jnp.minimum(h, 0.0)           # == -relu(-h), single VPU op
    # else: identity

    out_ref[...] = h.astype(out_ref.dtype)


def _choose_batch_tile(n, *, max_tile=2048):
    """Largest-tile-first batch tiling.

    Per-grid-step fixed cost (~0.35us) dominates this tiny memory-bound MLP, so
    use the fewest, biggest tiles: the whole batch for small N, otherwise ~2
    shards (so v7x megacore can split the 'parallel' axis; one extra step is
    noise on single-TC v5e/v6e), capped at `max_tile` rows so very large N
    still pipelines with big tiles.
    """
    if n <= 256:
        return n                                    # single tile, full extent
    half = ((pl.cdiv(n, 2) + 127) // 128) * 128     # lane-friendly shard
    return min(half, max_tile, n)


def tastenet_forward(z, weights, biases, *, activation="relu",
                     transform="exp", batch_tile=None,
                     compute_dtype=jnp.bfloat16):
    """Pallas TasteNet forward.

    z:       (N, D) float32 or bfloat16
    weights: list of (out_i, in_i) arrays   (PyTorch nn.Linear layout)
    biases:  list of (out_i,) arrays
    returns: (N, out_last), dtype = result_type(z, weights) (f32 for f32 params)
    """
    n_layers = len(weights)
    N, D = z.shape
    out_dim = weights[-1].shape[0]
    out_dtype = jnp.result_type(z.dtype, weights[0].dtype)

    tn = batch_tile if batch_tile is not None else _choose_batch_tile(N)
    grid = (pl.cdiv(N, tn),)

    # One-time, tiny (KB-scale) parameter layout plumbing: (out,in) -> (in,out)
    # so every layer is a canonical matmul; biases as (1,out) broadcast rows.
    params = []
    for w, b in zip(weights, biases):
        params.append(w.T)                          # (in_i, out_i)
        params.append(b.reshape(1, -1))             # (1, out_i)

    kernel = functools.partial(
        tastenet_kernel,
        activation=activation,
        transform=transform,
        n_layers=n_layers,
        compute_dtype=compute_dtype,
    )

    # z tiled along the batch (row) axis; parameters are tiny and stay resident
    # (same block index every grid step -> no per-step re-DMA).
    in_specs = [pl.BlockSpec((tn, D), lambda i: (i, 0))]
    for p in params:
        in_specs.append(pl.BlockSpec(p.shape, lambda i: (0, 0)))

    flops = 2 * N * sum(int(w.shape[0]) * int(w.shape[1]) for w in weights)
    bytes_accessed = (z.size * z.dtype.itemsize
                      + sum(p.size * p.dtype.itemsize for p in params)
                      + N * out_dim * jnp.dtype(out_dtype).itemsize)
    transcendentals = N * out_dim if transform == "exp" else 0

    return pl.pallas_call(
        kernel,
        out_shape=jax.ShapeDtypeStruct((N, out_dim), out_dtype),
        grid=grid,
        in_specs=in_specs,
        out_specs=pl.BlockSpec((tn, out_dim), lambda i: (i, 0)),
        compiler_params=pltpu.CompilerParams(
            dimension_semantics=("parallel",),
            # Per-tile footprint is O(100 KB) even at tn=2048; 8 MiB fits every
            # generation's scoped-VMEM budget with huge headroom.
            vmem_limit_bytes=8 * 1024 * 1024,
        ),
        cost_estimate=pl.CostEstimate(
            flops=flops,
            transcendentals=transcendentals,
            bytes_accessed=bytes_accessed,
        ),
    )(z, *params)


def tastenet_reference(z, weights, biases, *, activation="relu",
                       transform="exp", compute_dtype=jnp.float32):
    """Pure-JAX reference mirroring the PyTorch forward (nn.Linear layout).

    With compute_dtype=bfloat16 it also emulates the kernel's mixed-precision
    path (bf16 matmul operands, f32 accumulation) for tight comparisons.
    """
    h = z.astype(jnp.float32)
    n = len(weights)
    for i, (w, b) in enumerate(zip(weights, biases)):
        h = jnp.dot(h.astype(compute_dtype), w.astype(compute_dtype).T,
                    preferred_element_type=jnp.float32) + b.astype(jnp.float32)
        if i < n - 1:
            h = _apply_act(h, activation)
    if transform == "exp":
        out = -jnp.exp(-h)
    elif transform == "relu":
        out = -jnp.maximum(-h, 0.0)
    else:
        out = h
    return out


def init_params(key, layer_sizes):
    """Deterministic init matching nn.Linear (uniform +-1/sqrt(in), (out,in))."""
    weights, biases = [], []
    for fin, fout in zip(layer_sizes[:-1], layer_sizes[1:]):
        kw, kb, key = jax.random.split(key, 3)
        bound = 1.0 / jnp.sqrt(fin)
        weights.append(
            jax.random.uniform(kw, (fout, fin), jnp.float32, -bound, bound))
        biases.append(
            jax.random.uniform(kb, (fout,), jnp.float32, -bound, bound))
    return weights, biases


if __name__ == "__main__":
    # args.layer_sizes = [8, 32, 4], args.activation = 'relu'
    layer_sizes = [8, 32, 4]
    activation = "relu"
    N = 1024   # -> tile of 512 rows, grid of 2 "parallel" shards

    key = jax.random.PRNGKey(0)
    kz, kp = jax.random.split(key)
    z = jax.random.normal(kz, (N, layer_sizes[0]), jnp.float32)
    weights, biases = init_params(kp, layer_sizes)

    for transform in ("exp", "relu", "none"):
        ref = tastenet_reference(z, weights, biases,
                                 activation=activation, transform=transform)

        # Exact path: f32 MXU operands, tight check vs the PyTorch-equivalent ref.
        out_f32 = tastenet_forward(z, weights, biases, activation=activation,
                                   transform=transform,
                                   compute_dtype=jnp.float32)
        out_f32 = jax.block_until_ready(out_f32)
        assert out_f32.shape == (N, layer_sizes[-1])
        assert jnp.allclose(out_f32, ref, atol=1e-4, rtol=1e-4), (
            f"[{transform}/f32] max abs err "
            f"{float(jnp.max(jnp.abs(out_f32 - ref)))}")

        # Default fast path: bf16 MXU operands, f32 accumulation; compare to a
        # precision-matched reference.
        ref_bf = tastenet_reference(z, weights, biases, activation=activation,
                                    transform=transform,
                                    compute_dtype=jnp.bfloat16)
        out_bf = tastenet_forward(z, weights, biases, activation=activation,
                                  transform=transform)
        out_bf = jax.block_until_ready(out_bf)
        assert out_bf.shape == (N, layer_sizes[-1])
        assert jnp.allclose(out_bf, ref_bf, atol=2e-3, rtol=2e-3), (
            f"[{transform}/bf16] max abs err "
            f"{float(jnp.max(jnp.abs(out_bf - ref_bf)))}")

    # Small single-tile case (whole batch in one grid step).
    N2 = 200
    z2 = jax.random.normal(jax.random.PRNGKey(1), (N2, layer_sizes[0]),
                           jnp.float32)
    out2 = tastenet_forward(z2, weights, biases, activation=activation,
                            transform="exp")
    out2 = jax.block_until_ready(out2)
    ref2 = tastenet_reference(z2, weights, biases, activation=activation,
                              transform="exp", compute_dtype=jnp.bfloat16)
    assert jnp.allclose(out2, ref2, atol=2e-3, rtol=2e-3)

    print("KERNEL_OK")
</pallas_src>

<mosaic_0001>
module attributes {stable_mosaic.version = 11 : i64} {
  func.func @tastenet_kernel(%arg0: i32, %arg1: memref<512x8xf32, #tpu.memory_space<vmem>>, %arg2: memref<8x32xf32, #tpu.memory_space<vmem>>, %arg3: memref<1x32xf32, #tpu.memory_space<vmem>>, %arg4: memref<32x4xf32, #tpu.memory_space<vmem>>, %arg5: memref<1x4xf32, #tpu.memory_space<vmem>>, %arg6: memref<512x4xf32, #tpu.memory_space<vmem>>) attributes {dimension_semantics = [#tpu.dimension_semantics<parallel>], iteration_bounds = array<i64: 2>, scalar_prefetch = 0 : i64, scratch_operands = 0 : i64, tpu.core_type = #tpu.core_type<tc>, window_params = [{transform_indices = @transform_0, window_bounds = array<i64: 512, 8>}, {pipeline_mode = #tpu.pipeline_mode<synchronous>, transform_indices = @transform_1, window_bounds = array<i64: 8, 32>}, {pipeline_mode = #tpu.pipeline_mode<synchronous>, transform_indices = @transform_2, window_bounds = array<i64: 1, 32>}, {pipeline_mode = #tpu.pipeline_mode<synchronous>, transform_indices = @transform_3, window_bounds = array<i64: 32, 4>}, {pipeline_mode = #tpu.pipeline_mode<synchronous>, transform_indices = @transform_4, window_bounds = array<i64: 1, 4>}, {transform_indices = @transform_5, window_bounds = array<i64: 512, 4>}]} {
    %c0 = arith.constant 0 : index
    %c0_0 = arith.constant 0 : index
    %0 = vector.load %arg1[%c0, %c0_0] : memref<512x8xf32, #tpu.memory_space<vmem>>, vector<512x8xf32>
    %c0_1 = arith.constant 0 : index
    %c0_2 = arith.constant 0 : index
    %1 = vector.load %arg2[%c0_1, %c0_2] : memref<8x32xf32, #tpu.memory_space<vmem>>, vector<8x32xf32>
    %c0_3 = arith.constant 0 : index
    %c0_4 = arith.constant 0 : index
    %2 = vector.load %arg3[%c0_3, %c0_4] : memref<1x32xf32, #tpu.memory_space<vmem>>, vector<1x32xf32>
    %cst = arith.constant dense<0.000000e+00> : vector<512x32xf32>
    %3 = tpu.matmul %0, %1, %cst {dimension_numbers = #tpu.dot_dimension_numbers<[1], [0], [0], [1], [0, 0, 1, 1], [], []>} : vector<512x8xf32>, vector<8x32xf32>, vector<512x32xf32> -> vector<512x32xf32>
    %4 = vector.broadcast %2 : vector<1x32xf32> to vector<512x32xf32>
    %5 = arith.addf %3, %4 : vector<512x32xf32>
    %cst_5 = arith.constant 0.000000e+00 : f32
    %6 = vector.broadcast %cst_5 : f32 to vector<512x32xf32>
    %7 = arith.maximumf %5, %6 : vector<512x32xf32>
    %c0_6 = arith.constant 0 : index
    %c0_7 = arith.constant 0 : index
    %8 = vector.load %arg4[%c0_6, %c0_7] : memref<32x4xf32, #tpu.memory_space<vmem>>, vector<32x4xf32>
    %c0_8 = arith.constant 0 : index
    %c0_9 = arith.constant 0 : index
    %9 = vector.load %arg5[%c0_8, %c0_9] : memref<1x4xf32, #tpu.memory_space<vmem>>, vector<1x4xf32>
    %cst_10 = arith.constant dense<0.000000e+00> : vector<512x4xf32>
    %10 = tpu.matmul %7, %8, %cst_10 {dimension_numbers = #tpu.dot_dimension_numbers<[1], [0], [0], [1], [0, 0, 1, 1], [], []>} : vector<512x32xf32>, vector<32x4xf32>, vector<512x4xf32> -> vector<512x4xf32>
    %11 = vector.broadcast %9 : vector<1x4xf32> to vector<512x4xf32>
    %12 = arith.addf %10, %11 : vector<512x4xf32>
    %cst_11 = arith.constant 0.000000e+00 : f32
    %13 = vector.broadcast %cst_11 : f32 to vector<512x4xf32>
    %14 = arith.subf %13, %12 : vector<512x4xf32>
    %15 = math.exp %14 : vector<512x4xf32>
    %cst_12 = arith.constant 0.000000e+00 : f32
    %16 = vector.broadcast %cst_12 : f32 to vector<512x4xf32>
    %17 = arith.subf %16, %15 : vector<512x4xf32>
    %c0_13 = arith.constant 0 : index
    %c0_14 = arith.constant 0 : index
    %18 = vector.load %arg6[%c0_13, %c0_14] : memref<512x4xf32, #tpu.memory_space<vmem>>, vector<512x4xf32>
    tpu.vector_store %arg6[%c0_13, %c0_14], %17 {strides = array<i32>} : memref<512x4xf32, #tpu.memory_space<vmem>>, vector<512x4xf32>,
    return
  }
  func.func @transform_0(%arg0: i32) -> (i32, i32) {
    %c0_i32 = arith.constant 0 : i32
    %c0_i32_0 = arith.constant 0 : i32
    return %arg0, %c0_i32 : i32, i32
  }
  func.func @transform_1(%arg0: i32) -> (i32, i32) {
    %c0_i32 = arith.constant 0 : i32
    %c0_i32_0 = arith.constant 0 : i32
    %c0_i32_1 = arith.constant 0 : i32
    return %c0_i32, %c0_i32_0 : i32, i32
  }
  func.func @transform_2(%arg0: i32) -> (i32, i32) {
    %c0_i32 = arith.constant 0 : i32
    %c0_i32_0 = arith.constant 0 : i32
    %c0_i32_1 = arith.constant 0 : i32
    return %c0_i32, %c0_i32_0 : i32, i32
  }
  func.func @transform_3(%arg0: i32) -> (i32, i32) {
    %c0_i32 = arith.constant 0 : i32
    %c0_i32_0 = arith.constant 0 : i32
    %c0_i32_1 = arith.constant 0 : i32
    return %c0_i32, %c0_i32_0 : i32, i32
  }
  func.func @transform_4(%arg0: i32) -> (i32, i32) {
    %c0_i32 = arith.constant 0 : i32
    %c0_i32_0 = arith.constant 0 : i32
    %c0_i32_1 = arith.constant 0 : i32
    return %c0_i32, %c0_i32_0 : i32, i32
  }
  func.func @transform_5(%arg0: i32) -> (i32, i32) {
    %c0_i32 = arith.constant 0 : i32
    %c0_i32_0 = arith.constant 0 : i32
    return %arg0, %c0_i32 : i32, i32
  }
}

</mosaic_0001>

<bundles_post_ra>
// kernel: tpu_custom_call.1
= control target key start
LH: loop header
LB: loop body
LE: loop exit
PB: predicated region body
PF: predicated region fallthrough
CT: control target
= control target key end

     0   :  { %s1872_s18 = smov 0   ;;  %s2383_s0 = inlined_call_operand.vmem [shape: f32[1024,8], index: 0, kind: input, shape index: {}]   ;;  %s2384_s1 = inlined_call_operand.vmem [shape: f32[8,32], index: 1, kind: input, shape index: {}]   ;;  %s2385_s2 = inlined_call_operand.vmem [shape: f32[1,32], index: 2, kind: input, shape index: {}]   ;;  %s2386_s3 = inlined_call_operand.vmem [shape: f32[32,4], index: 3, kind: input, shape index: {}]   ;;  %s2387_s4 = inlined_call_operand.vmem [shape: f32[1,4], index: 4, kind: input, shape index: {}]   ;;  %s2388_s5 = inlined_call_operand.vmem [shape: f32[1024,4], index: 5, kind: output, shape index: {}]  }
   0x1 LB: > { %s1550_s19 = sadd.s32 4294967295, %s1840_s18   ;;  %p1554_p0 = scmp.ge.s32.totalorder %s1840_s18, 1  ;;  %s1840_s18 = sphi %s1872_s18, %s15_s18  }
   0x2   : > { %p188_p1 = scmp.lt.s32.totalorder %s1840_s18, 3 }
   0x4   : > { %p189_p2 = pnand %p1554_p0, %p188_p1 }
   0x5   : > { %s1555_s22 = sshll.u32 (!%p189_p2), %s1550_s19, 6 }
   0x6   : > { %192 = sbr.rel (%p189_p2) target bundleno = 797 (0x31d), region = 40  ;;  %p217_p3 = scmp.lt.s32.totalorder (!%p189_p2), %s1555_s22, 127 }
   0xb   : > { %v292_v0 = vld [vmem:[%s2384_s1] sm:$0xff]  ;;  %s2390_s22 = smov (!%p217_p3, %s1555_s22), 127  ;;  %vm297_vm0 = vcmask 64512   ;;  %v766_v13 = vld [vmem:[%s2386_s3 + $0x18] sm:$0xff]  ;;  %v765_v14 = vld [vmem:[%s2386_s3 + $0x10] sm:$0xff]  ;;  %vm771_vm1 = vcmask 261120  }
   0xc   : > { %505 = vmatpush.msra.mxu0 %v292_v0  ;;  %1689 = vmatpush.msra.mxu3 %v292_v0  ;;  %s1556_s23 = sshll.u32 %s2390_s22, 3  ;;  %v764_v16 = vld [vmem:[%s2386_s3 + $0x8] sm:$0xff]  ;;  %v763_v17 = vld [vmem:[%s2386_s3] sm:$0xff]  ;;  %vm1429_vm2 = vcmask 31744  }
   0xd   : > { %s1891_s26 = scalar_lea.vmem %s2383_s0, %s1556_s23  ;;  %976 = vmatpush.msra.mxu1 %v766_v13  ;;  %1690 = vmatpush.msra.mxu2 %v766_v13  ;;  %v1940_v21 = vld [vmem:[%s2385_s2] ss:$0 sm:$0xff]  ;;  %s2036_s16 = scalar_lea.vmem %s2388_s5, %s1556_s23 }
   0xe   : > { %v228_v1 = vld [vmem:[%s1891_s26] sm:$0xff]  ;;  %v229_v2 = vld [vmem:[%s1891_s26 + $0x8] sm:$0xff]  ;;  %v230_v3 = vld [vmem:[%s1891_s26 + $0x10] sm:$0xff] }
   0xf   : > { %1559 = vmatmul.msk.f32.vlgmr.msra.gmra.mxu0 %vm297_vm0, %v228_v1  ;;  %v231_v4 = vld [vmem:[%s1891_s26 + $0x18] sm:$0xff]  ;;  %v232_v5 = vld [vmem:[%s1891_s26 + $0x20] sm:$0xff]  ;;  %v233_v6 = vld [vmem:[%s1891_s26 + $0x28] sm:$0xff]  ;;  %977 = vmatpush.msra.mxu1 %v765_v14 }
  0x10   : > { %v234_v7 = vld [vmem:[%s1891_s26 + $0x30] sm:$0xff]  ;;  %v235_v8 = vld [vmem:[%s1891_s26 + $0x38] sm:$0xff]  ;;  %v236_v9 = vld [vmem:[%s1891_s26 + $0x40] sm:$0xff]  ;;  %1691 = vmatpush.msra.mxu2 %v765_v14 }
  0x11   : > { %v237_v10 = vld [vmem:[%s1891_s26 + $0x48] sm:$0xff]  ;;  %v238_v11 = vld [vmem:[%s1891_s26 + $0x50] sm:$0xff]  ;;  %v239_v12 = vld [vmem:[%s1891_s26 + $0x58] sm:$0xff]  ;;  %978 = vmatpush.msra.mxu1 %v764_v16 }
  0x12   : > { %v240_v15 = vld [vmem:[%s1891_s26 + $0x60] sm:$0xff]  ;;  %1692 = vmatpush.msra.mxu2 %v764_v16  ;;  %v241_v18 = vld [vmem:[%s1891_s26 + $0x68] sm:$0xff]  ;;  %v242_v19 = vld [vmem:[%s1891_s26 + $0x70] sm:$0xff] }
  0x13   : > { %979 = vmatpush.msra.mxu1 %v763_v17  ;;  %v243_v20 = vld [vmem:[%s1891_s26 + $0x78] sm:$0xff]  ;;  %v244_v23 = vld [vmem:[%s1891_s26 + $0x80] sm:$0xff]  ;;  %v245_v27 = vld [vmem:[%s1891_s26 + $0x88] sm:$0xff] }
  0x14   : > { %1693 = vmatpush.msra.mxu2 %v763_v17  ;;  %v246_v31 = vld [vmem:[%s1891_s26 + $0x90] sm:$0xff]  ;;  %v247_v35 = vld [vmem:[%s1891_s26 + $0x98] sm:$0xff]  ;;  %v248_v39 = vld [vmem:[%s1891_s26 + $0xa0] sm:$0xff] }
  0x15   : > { %v249_v43 = vld [vmem:[%s1891_s26 + $0xa8] sm:$0xff]  ;;  %v250_v47 = vld [vmem:[%s1891_s26 + $0xb0] sm:$0xff]  ;;  %v251_v51 = vld [vmem:[%s1891_s26 + $0xb8] sm:$0xff] }
  0x16   : > { %v252_v55 = vld [vmem:[%s1891_s26 + $0xc0] sm:$0xff]  ;;  %v253_v59 = vld [vmem:[%s1891_s26 + $0xc8] sm:$0xff]  ;;  %v254_v63 = vld [vmem:[%s1891_s26 + $0xd0] sm:$0xff] }
  0x17   : > { %1560 = vmatmul.msk.f32.gmra.mxu0 %vm297_vm0, %v229_v2  ;;  %v258_v17 = vld [vmem:[%s1891_s26 + $0xf0] sm:$0xff] }
  0x1f   : > { %1561 = vmatmul.msk.f32.gmra.mxu0 %vm297_vm0, %v230_v3  ;;  %v255_v3 = vld [vmem:[%s1891_s26 + $0xd8] sm:$0xff] }
  0x27   : > { %1562 = vmatmul.msk.f32.gmra.mxu0 %vm297_vm0, %v231_v4 }
  0x2f   : > { %1563 = vmatmul.msk.f32.gmra.mxu0 %vm297_vm0, %v232_v5 }
  0x37   : > { %1564 = vmatmul.msk.f32.gmra.mxu0 %vm297_vm0, %v233_v6 }
  0x3f   : > { %1565 = vmatmul.msk.f32.gmra.mxu0 %vm297_vm0, %v234_v7  ;;  %v256_v7 = vld [vmem:[%s1891_s26 + $0xe0] sm:$0xff] }
  0x47   : > { %1566 = vmatmul.msk.f32.gmra.mxu0 %vm297_vm0, %v235_v8 }
  0x4f   : > { %1567 = vmatmul.msk.f32.gmra.mxu0 %vm297_vm0, %v236_v9 }
  0x57   : > { %1568 = vmatmul.msk.f32.gmra.mxu0 %vm297_vm0, %v237_v10  ;;  %v261_v10 = vld [vmem:[%s1891_s26 + $0x108] sm:$0xff] }
  0x58   : > { %1592 = vmatmul.msk.f32.vlgmr.msra.gmra.mxu3 %vm297_vm0, %v261_v10 }
  0x5f   : > { %1569 = vmatmul.msk.f32.gmra.mxu0 %vm297_vm0, %v238_v11 }
  0x67   : > { %1570 = vmatmul.msk.f32.gmra.mxu0 %vm297_vm0, %v239_v12  ;;  %v257_v12 = vld [vmem:[%s1891_s26 + $0xe8] sm:$0xff] }
  0x6f   : > { %1571 = vmatmul.msk.f32.gmra.mxu0 %vm297_vm0, %v240_v15  ;;  %v262_v15 = vld [vmem:[%s1891_s26 + $0x110] sm:$0xff] }
  0x70   : > { %1593 = vmatmul.msk.f32.gmra.mxu3 %vm297_vm0, %v262_v15 }
  0x77   : > { %1572 = vmatmul.msk.f32.gmra.mxu0 %vm297_vm0, %v241_v18 }
  0x7f   : > { %1573 = vmatmul.msk.f32.gmra.mxu0 %vm297_vm0, %v242_v19 }
  0x87   : > { %1574 = vmatmul.msk.f32.gmra.mxu0 %vm297_vm0, %v243_v20  ;;  %v263_v20 = vld [vmem:[%s1891_s26 + $0x118] sm:$0xff] }
  0x88   : > { %1594 = vmatmul.msk.f32.gmra.mxu3 %vm297_vm0, %v263_v20 }
  0x8c   : > { %v507_v22 = vpop.f32.mrf.mxu0 }
  0x8d   : > { %v508_v24 = vadd.f32 %v1940_v21, %v507_v22 }
  0x8f   : > { %v699_v25 = vmax.f32 %v508_v24, 0.0  ;;  %1575 = vmatmul.msk.f32.gmra.mxu0 %vm297_vm0, %v244_v23  ;;  %v259_v23 = vld [vmem:[%s1891_s26 + $0xf8] sm:$0xff] }
  0x91   : > { %1623 = vmatmul.msk.f32.vlgmr.msra.gmra.mxu1 %vm771_vm1, %v699_v25 }
  0x94   : > { %v510_v26 = vpop.f32.mrf.mxu0 }
  0x95   : > { %v511_v28 = vadd.f32 %v1940_v21, %v510_v26  ;;  %v264_v26 = vld [vmem:[%s1891_s26 + $0x120] sm:$0xff] }
  0x96   : > { %1595 = vmatmul.msk.f32.gmra.mxu3 %vm297_vm0, %v264_v26 }
  0x97   : > { %v700_v29 = vmax.f32 %v511_v28, 0.0  ;;  %1576 = vmatmul.msk.f32.gmra.mxu0 %vm297_vm0, %v245_v27  ;;  %v2017_v27 = vld [vmem:[%s2387_s4] ss:$0 sm:$0xff] }
  0x99   : > { %1624 = vmatmul.msk.f32.gmra.mxu1 %vm771_vm1, %v700_v29  ;;  %v260_v29 = vld [vmem:[%s1891_s26 + $0x100] sm:$0xff] }
  0x9c   : > { %v513_v30 = vpop.f32.mrf.mxu0 }
  0x9d   : > { %v514_v32 = vadd.f32 %v1940_v21, %v513_v30 }
  0x9f   : > { %v701_v33 = vmax.f32 %v514_v32, 0.0  ;;  %1577 = vmatmul.msk.f32.gmra.mxu0 %vm297_vm0, %v246_v31 }
  0xa1   : > { %1625 = vmatmul.msk.f32.gmra.mxu1 %vm771_vm1, %v701_v33 }
  0xa4   : > { %v516_v34 = vpop.f32.mrf.mxu0 }
  0xa5   : > { %v517_v36 = vadd.f32 %v1940_v21, %v516_v34  ;;  %v265_v34 = vld [vmem:[%s1891_s26 + $0x128] sm:$0xff] }
  0xa6   : > { %1596 = vmatmul.msk.f32.gmra.mxu3 %vm297_vm0, %v265_v34 }
  0xa7   : > { %v702_v37 = vmax.f32 %v517_v36, 0.0  ;;  %1578 = vmatmul.msk.f32.gmra.mxu0 %vm297_vm0, %v247_v35 }
  0xa9   : > { %1626 = vmatmul.msk.f32.gmra.mxu1 %vm771_vm1, %v702_v37 }
  0xac   : > { %v519_v38 = vpop.f32.mrf.mxu0 }
  0xad   : > { %v520_v40 = vadd.f32 %v1940_v21, %v519_v38 }
  0xaf   : > { %v703_v41 = vmax.f32 %v520_v40, 0.0  ;;  %1579 = vmatmul.msk.f32.gmra.mxu0 %vm297_vm0, %v248_v39 }
  0xb1   : > { %1627 = vmatmul.msk.f32.gmra.mxu1 %vm771_vm1, %v703_v41 }
  0xb4   : > { %v522_v42 = vpop.f32.mrf.mxu0 }
  0xb5   : > { %v523_v44 = vadd.f32 %v1940_v21, %v522_v42  ;;  %v266_v42 = vld [vmem:[%s1891_s26 + $0x130] sm:$0xff] }
  0xb6   : > { %1597 = vmatmul.msk.f32.gmra.mxu3 %vm297_vm0, %v266_v42 }
  0xb7   : > { %v704_v45 = vmax.f32 %v523_v44, 0.0  ;;  %1580 = vmatmul.msk.f32.gmra.mxu0 %vm297_vm0, %v249_v43 }
  0xb9   : > { %1628 = vmatmul.msk.f32.gmra.mxu1 %vm771_vm1, %v704_v45 }
  0xbc   : > { %v525_v46 = vpop.f32.mrf.mxu0 }
  0xbd   : > { %v526_v48 = vadd.f32 %v1940_v21, %v525_v46 }
  0xbf   : > { %v705_v49 = vmax.f32 %v526_v48, 0.0  ;;  %1581 = vmatmul.msk.f32.gmra.mxu0 %vm297_vm0, %v250_v47 }
  0xc1   : > { %1629 = vmatmul.msk.f32.gmra.mxu1 %vm771_vm1, %v705_v49 }
  0xc4   : > { %v528_v50 = vpop.f32.mrf.mxu0 }
  0xc5   : > { %v529_v52 = vadd.f32 %v1940_v21, %v528_v50 }
  0xc7   : > { %v706_v53 = vmax.f32 %v529_v52, 0.0  ;;  %1582 = vmatmul.msk.f32.gmra.mxu0 %vm297_vm0, %v251_v51  ;;  %v267_v52 = vld [vmem:[%s1891_s26 + $0x138] sm:$0xff] }
  0xc8   : > { %1598 = vmatmul.msk.f32.gmra.mxu3 %vm297_vm0, %v267_v52 }
  0xc9   : > { %1630 = vmatmul.msk.f32.gmra.mxu1 %vm771_vm1, %v706_v53 }
  0xcc   : > { %v531_v54 = vpop.f32.mrf.mxu0 }
  0xcd   : > { %v532_v56 = vadd.f32 %v1940_v21, %v531_v54 }
  0xcf   : > { %v707_v57 = vmax.f32 %v532_v56, 0.0  ;;  %1583 = vmatmul.msk.f32.gmra.mxu0 %vm297_vm0, %v252_v55 }
  0xd1   : > { %1631 = vmatmul.msk.f32.gmra.mxu1 %vm771_vm1, %v707_v57 }
  0xd4   : > { %v534_v58 = vpop.f32.mrf.mxu0 }
  0xd5   : > { %v535_v60 = vadd.f32 %v1940_v21, %v534_v58 }
  0xd7   : > { %v708_v61 = vmax.f32 %v535_v60, 0.0  ;;  %1584 = vmatmul.msk.f32.gmra.mxu0 %vm297_vm0, %v253_v59 }
  0xd9   : > { %1632 = vmatmul.msk.f32.gmra.mxu1 %vm771_vm1, %v708_v61 }
  0xdc   : > { %v537_v62 = vpop.f32.mrf.mxu0 }
  0xdd   : > { %v538_v0 = vadd.f32 %v1940_v21, %v537_v62  ;;  %v268_v62 = vld [vmem:[%s1891_s26 + $0x140] sm:$0xff] }
  0xde   : > { %1599 = vmatmul.msk.f32.gmra.mxu3 %vm297_vm0, %v268_v62 }
  0xdf   : > { %v709_v1 = vmax.f32 %v538_v0, 0.0  ;;  %1585 = vmatmul.msk.f32.gmra.mxu0 %vm297_vm0, %v254_v63 }
  0xe1   : > { %1633 = vmatmul.msk.f32.gmra.mxu1 %vm771_vm1, %v709_v1 }
  0xe4   : > { %v540_v2 = vpop.f32.mrf.mxu0 }
  0xe5   : > { %v541_v4 = vadd.f32 %v1940_v21, %v540_v2 }
  0xe7   : > { %v710_v5 = vmax.f32 %v541_v4, 0.0  ;;  %1586 = vmatmul.msk.f32.gmra.mxu0 %vm297_vm0, %v255_v3 }
  0xe9   : > { %1634 = vmatmul.msk.f32.gmra.mxu1 %vm771_vm1, %v710_v5 }
  0xec   : > { %v543_v6 = vpop.f32.mrf.mxu0 }
  0xed   : > { %v544_v8 = vadd.f32 %v1940_v21, %v543_v6 }
  0xef   : > { %v711_v9 = vmax.f32 %v544_v8, 0.0  ;;  %1587 = vmatmul.msk.f32.gmra.mxu0 %vm297_vm0, %v256_v7  ;;  %v269_v8 = vld [vmem:[%s1891_s26 + $0x148] sm:$0xff] }
  0xf0   : > { %1600 = vmatmul.msk.f32.gmra.mxu3 %vm297_vm0, %v269_v8 }
  0xf1   : > { %1635 = vmatmul.msk.f32.gmra.mxu1 %vm771_vm1, %v711_v9 }
  0xf4   : > { %v546_v11 = vpop.f32.mrf.mxu0 }
  0xf5   : > { %v547_v13 = vadd.f32 %v1940_v21, %v546_v11 }
  0xf7   : > { %v712_v14 = vmax.f32 %v547_v13, 0.0  ;;  %1588 = vmatmul.msk.f32.gmra.mxu0 %vm297_vm0, %v257_v12 }
  0xf9   : > { %1636 = vmatmul.msk.f32.gmra.mxu1 %vm771_vm1, %v712_v14 }
  0xfc   : > { %v549_v16 = vpop.f32.mrf.mxu0 }
  0xfd   : > { %v550_v18 = vadd.f32 %v1940_v21, %v549_v16 }
  0xff   : > { %v713_v19 = vmax.f32 %v550_v18, 0.0  ;;  %1589 = vmatmul.msk.f32.gmra.mxu0 %vm297_vm0, %v258_v17  ;;  %v270_v18 = vld [vmem:[%s1891_s26 + $0x150] sm:$0xff] }
 0x100   : > { %1601 = vmatmul.msk.f32.gmra.mxu3 %vm297_vm0, %v270_v18 }
 0x101   : > { %1637 = vmatmul.msk.f32.gmra.mxu1 %vm771_vm1, %v713_v19 }
 0x104   : > { %v552_v22 = vpop.f32.mrf.mxu0 }
 0x105   : > { %v553_v24 = vadd.f32 %v1940_v21, %v552_v22 }
 0x107   : > { %v714_v25 = vmax.f32 %v553_v24, 0.0  ;;  %1590 = vmatmul.msk.f32.gmra.mxu0 %vm297_vm0, %v259_v23 }
 0x109   : > { %1638 = vmatmul.msk.f32.gmra.mxu1 %vm771_vm1, %v714_v25 }
 0x10c   : > { %v555_v28 = vpop.f32.mrf.mxu0 }
 0x10d   : > { %v556_v30 = vadd.f32 %v1940_v21, %v555_v28 }
 0x10e   : > { %v981_v31 = vpop.f32.mrf.mxu1 }
 0x10f   : > { %v715_v32 = vmax.f32 %v556_v30, 0.0  ;;  %v982_v33 = vadd.f32 %v2017_v27, %v981_v31  ;;  %1591 = vmatmul.msk.f32.gmra.mxu0 %vm297_vm0, %v260_v29  ;;  %v271_v30 = vld [vmem:[%s1891_s26 + $0x158] sm:$0xff] }
 0x110   : > { %1602 = vmatmul.msk.f32.gmra.mxu3 %vm297_vm0, %v271_v30 }
 0x111   : > { %v1173_v35 = vsub.f32 0.0, %v982_v33  ;;  %1639 = vmatmul.msk.f32.gmra.mxu1 %vm771_vm1, %v715_v32 }
 0x113   : > { %v1237_v36 = vmul.f32 1.442695, %v1173_v35 }
 0x114   : > { %v558_v37 = vpop.f32.mrf.mxu0 }
 0x115   : > { %1704 = vpow2.f32 %v1237_v36  ;;  %v559_v38 = vadd.f32 %v1940_v21, %v558_v37 }
 0x116   : > { %v984_v39 = vpop.f32.mrf.mxu1 }
 0x117   : > { %v716_v40 = vmax.f32 %v559_v38, 0.0  ;;  %v985_v41 = vadd.f32 %v2017_v27, %v984_v39 }
 0x119   : > { %v1174_v43 = vsub.f32 0.0, %v985_v41  ;;  %1640 = vmatmul.msk.f32.gmra.mxu1 %vm771_vm1, %v716_v40  ;;  %v272_v40 = vld [vmem:[%s1891_s26 + $0x160] sm:$0xff] }
 0x11a   : > { %1603 = vmatmul.msk.f32.gmra.mxu3 %vm297_vm0, %v272_v40 }
 0x11b   : > { %v1705_v44 = vpop.eup %1704  ;;  %v1239_v45 = vmul.f32 1.442695, %v1174_v43 }
 0x11c   : > { %v1365_v46 = vsub.f32 0.0, %v1705_v44  ;;  %v561_v47 = vpop.f32.mrf.mxu0 }
 0x11d   : > { %1706 = vpow2.f32 %v1239_v45  ;;  %v562_v48 = vadd.f32 %v1940_v21, %v561_v47 }
 0x11e   : > { %1430 = vst.msk [vmem:[%s2036_s16] sm:$0xff] %vm1429_vm2, %v1365_v46  ;;  %v987_v49 = vpop.f32.mrf.mxu1 }
 0x11f   : > { %v717_v50 = vmax.f32 %v562_v48, 0.0  ;;  %v988_v51 = vadd.f32 %v2017_v27, %v987_v49 }
 0x121   : > { %v1175_v53 = vsub.f32 0.0, %v988_v51  ;;  %1641 = vmatmul.msk.f32.gmra.mxu1 %vm771_vm1, %v717_v50  ;;  %v273_v50 = vld [vmem:[%s1891_s26 + $0x168] sm:$0xff] }
 0x122   : > { %1604 = vmatmul.msk.f32.gmra.mxu3 %vm297_vm0, %v273_v50  ;;  %v279_v50 = vld [vmem:[%s1891_s26 + $0x198] sm:$0xff] }
 0x123   : > { %v1707_v54 = vpop.eup %1706  ;;  %v1241_v55 = vmul.f32 1.442695, %v1175_v53 }
 0x124   : > { %v1366_v56 = vsub.f32 0.0, %v1707_v54  ;;  %v564_v57 = vpop.f32.mrf.mxu0 }
 0x125   : > { %1708 = vpow2.f32 %v1241_v55  ;;  %v565_v58 = vadd.f32 %v1940_v21, %v564_v57 }
 0x126   : > { %1431 = vst.msk [vmem:[%s2036_s16 + $0x8] sm:$0xff] %vm1429_vm2, %v1366_v56  ;;  %v990_v59 = vpop.f32.mrf.mxu1 }
 0x127   : > { %v718_v60 = vmax.f32 %v565_v58, 0.0  ;;  %v991_v61 = vadd.f32 %v2017_v27, %v990_v59 }
 0x129   : > { %v1176_v63 = vsub.f32 0.0, %v991_v61  ;;  %1642 = vmatmul.msk.f32.gmra.mxu1 %vm771_vm1, %v718_v60  ;;  %v274_v60 = vld [vmem:[%s1891_s26 + $0x170] sm:$0xff] }
 0x12a   : > { %1605 = vmatmul.msk.f32.gmra.mxu3 %vm297_vm0, %v274_v60 }
 0x12b   : > { %v1709_v0 = vpop.eup %1708  ;;  %v1243_v1 = vmul.f32 1.442695, %v1176_v63 }
 0x12c   : > { %v1367_v2 = vsub.f32 0.0, %v1709_v0  ;;  %v567_v3 = vpop.f32.mrf.mxu0 }
 0x12d   : > { %1710 = vpow2.f32 %v1243_v1  ;;  %v568_v4 = vadd.f32 %v1940_v21, %v567_v3 }
 0x12e   : > { %1432 = vst.msk [vmem:[%s2036_s16 + $0x10] sm:$0xff] %vm1429_vm2, %v1367_v2  ;;  %v993_v5 = vpop.f32.mrf.mxu1 }
 0x12f   : > { %v719_v6 = vmax.f32 %v568_v4, 0.0  ;;  %v994_v7 = vadd.f32 %v2017_v27, %v993_v5 }
 0x131   : > { %v1177_v9 = vsub.f32 0.0, %v994_v7  ;;  %1643 = vmatmul.msk.f32.gmra.mxu1 %vm771_vm1, %v719_v6  ;;  %v275_v6 = vld [vmem:[%s1891_s26 + $0x178] sm:$0xff] }
 0x132   : > { %1606 = vmatmul.msk.f32.gmra.mxu3 %vm297_vm0, %v275_v6 }
 0x133   : > { %v1711_v10 = vpop.eup %1710  ;;  %v1245_v11 = vmul.f32 1.442695, %v1177_v9 }
 0x134   : > { %v1368_v12 = vsub.f32 0.0, %v1711_v10  ;;  %v570_v13 = vpop.f32.mrf.mxu0 }
 0x135   : > { %1712 = vpow2.f32 %v1245_v11  ;;  %v571_v14 = vadd.f32 %v1940_v21, %v570_v13 }
 0x136   : > { %1433 = vst.msk [vmem:[%s2036_s16 + $0x18] sm:$0xff] %vm1429_vm2, %v1368_v12  ;;  %v996_v15 = vpop.f32.mrf.mxu1 }
 0x137   : > { %v720_v16 = vmax.f32 %v571_v14, 0.0  ;;  %v997_v17 = vadd.f32 %v2017_v27, %v996_v15 }
 0x139   : > { %v1178_v19 = vsub.f32 0.0, %v997_v17  ;;  %1644 = vmatmul.msk.f32.gmra.mxu1 %vm771_vm1, %v720_v16  ;;  %v276_v16 = vld [vmem:[%s1891_s26 + $0x180] sm:$0xff] }
 0x13a   : > { %1607 = vmatmul.msk.f32.gmra.mxu3 %vm297_vm0, %v276_v16 }
 0x13b   : > { %v1713_v20 = vpop.eup %1712  ;;  %v1247_v22 = vmul.f32 1.442695, %v1178_v19 }
 0x13c   : > { %v1369_v23 = vsub.f32 0.0, %v1713_v20  ;;  %v573_v24 = vpop.f32.mrf.mxu0 }
 0x13d   : > { %1714 = vpow2.f32 %v1247_v22  ;;  %v574_v25 = vadd.f32 %v1940_v21, %v573_v24 }
 0x13e   : > { %1434 = vst.msk [vmem:[%s2036_s16 + $0x20] sm:$0xff] %vm1429_vm2, %v1369_v23  ;;  %v999_v26 = vpop.f32.mrf.mxu1 }
 0x13f   : > { %v721_v28 = vmax.f32 %v574_v25, 0.0  ;;  %v1000_v29 = vadd.f32 %v2017_v27, %v999_v26 }
 0x141   : > { %v1179_v31 = vsub.f32 0.0, %v1000_v29  ;;  %1645 = vmatmul.msk.f32.gmra.mxu1 %vm771_vm1, %v721_v28  ;;  %v277_v28 = vld [vmem:[%s1891_s26 + $0x188] sm:$0xff] }
 0x142   : > { %1608 = vmatmul.msk.f32.gmra.mxu3 %vm297_vm0, %v277_v28 }
 0x143   : > { %v1715_v32 = vpop.eup %1714  ;;  %v1249_v33 = vmul.f32 1.442695, %v1179_v31 }
 0x144   : > { %v1370_v34 = vsub.f32 0.0, %v1715_v32  ;;  %v576_v35 = vpop.f32.mrf.mxu0 }
 0x145   : > { %1716 = vpow2.f32 %v1249_v33  ;;  %v577_v36 = vadd.f32 %v1940_v21, %v576_v35 }
 0x146   : > { %1435 = vst.msk [vmem:[%s2036_s16 + $0x28] sm:$0xff] %vm1429_vm2, %v1370_v34  ;;  %v1002_v37 = vpop.f32.mrf.mxu1  ;;  %v606_v34 = vpop.f32.mrf.mxu3 }
 0x147   : > { %v722_v38 = vmax.f32 %v577_v36, 0.0  ;;  %v1003_v39 = vadd.f32 %v2017_v27, %v1002_v37 }
 0x149   : > { %v1180_v41 = vsub.f32 0.0, %v1003_v39  ;;  %1646 = vmatmul.msk.f32.gmra.mxu1 %vm771_vm1, %v722_v38  ;;  %v278_v39 = vld [vmem:[%s1891_s26 + $0x190] sm:$0xff] }
 0x14a   : > { %1609 = vmatmul.msk.f32.gmra.mxu3 %vm297_vm0, %v278_v39 }
 0x14b   : > { %v1717_v42 = vpop.eup %1716  ;;  %v1251_v43 = vmul.f32 1.442695, %v1180_v41 }
 0x14c   : > { %v1371_v44 = vsub.f32 0.0, %v1717_v42  ;;  %v579_v45 = vpop.f32.mrf.mxu0 }
 0x14d   : > { %1718 = vpow2.f32 %v1251_v43  ;;  %v580_v46 = vadd.f32 %v1940_v21, %v579_v45 }
 0x14e   : > { %1436 = vst.msk [vmem:[%s2036_s16 + $0x30] sm:$0xff] %vm1429_vm2, %v1371_v44  ;;  %v1005_v47 = vpop.f32.mrf.mxu1  ;;  %v609_v45 = vpop.f32.mrf.mxu3 }
 0x14f   : > { %v723_v48 = vmax.f32 %v580_v46, 0.0  ;;  %v1006_v49 = vadd.f32 %v2017_v27, %v1005_v47 }
 0x151   : > { %v1181_v51 = vsub.f32 0.0, %v1006_v49  ;;  %1647 = vmatmul.msk.f32.gmra.mxu1 %vm771_vm1, %v723_v48 }
 0x152   : > { %1610 = vmatmul.msk.f32.gmra.mxu3 %vm297_vm0, %v279_v50  ;;  %v285_v50 = vld [vmem:[%s1891_s26 + $0x1c8] sm:$0xff] }
 0x153   : > { %v1719_v52 = vpop.eup %1718  ;;  %v1253_v53 = vmul.f32 1.442695, %v1181_v51 }
 0x154   : > { %v1372_v54 = vsub.f32 0.0, %v1719_v52  ;;  %v582_v55 = vpop.f32.mrf.mxu0 }
 0x155   : > { %1720 = vpow2.f32 %v1253_v53  ;;  %v583_v56 = vadd.f32 %v1940_v21, %v582_v55 }
 0x156   : > { %1437 = vst.msk [vmem:[%s2036_s16 + $0x38] sm:$0xff] %vm1429_vm2, %v1372_v54  ;;  %v1008_v57 = vpop.f32.mrf.mxu1 }
 0x157   : > { %v724_v58 = vmax.f32 %v583_v56, 0.0  ;;  %v1009_v59 = vadd.f32 %v2017_v27, %v1008_v57  ;;  %v612_v56 = vpop.f32.mrf.mxu3 }
 0x159   : > { %v1182_v61 = vsub.f32 0.0, %v1009_v59  ;;  %1648 = vmatmul.msk.f32.gmra.mxu1 %vm771_vm1, %v724_v58 }
 0x15b   : > { %v1721_v62 = vpop.eup %1720  ;;  %v1255_v63 = vmul.f32 1.442695, %v1182_v61  ;;  %v280_v61 = vld [vmem:[%s1891_s26 + $0x1a0] sm:$0xff] }
 0x15c   : > { %v1373_v0 = vsub.f32 0.0, %v1721_v62  ;;  %v585_v1 = vpop.f32.mrf.mxu0  ;;  %1611 = vmatmul.msk.f32.gmra.mxu3 %vm297_vm0, %v280_v61 }
 0x15d   : > { %1722 = vpow2.f32 %v1255_v63  ;;  %v586_v2 = vadd.f32 %v1940_v21, %v585_v1 }
 0x15e   : > { %1438 = vst.msk [vmem:[%s2036_s16 + $0x40] sm:$0xff] %vm1429_vm2, %v1373_v0  ;;  %v1011_v3 = vpop.f32.mrf.mxu1 }
 0x15f   : > { %v725_v4 = vmax.f32 %v586_v2, 0.0  ;;  %v1012_v5 = vadd.f32 %v2017_v27, %v1011_v3  ;;  %v615_v3 = vpop.f32.mrf.mxu3 }
 0x161   : > { %v1183_v7 = vsub.f32 0.0, %v1012_v5  ;;  %1649 = vmatmul.msk.f32.gmra.mxu1 %vm771_vm1, %v725_v4 }
 0x163   : > { %v1723_v8 = vpop.eup %1722  ;;  %v1257_v9 = vmul.f32 1.442695, %v1183_v7 }
 0x164   : > { %v1374_v10 = vsub.f32 0.0, %v1723_v8  ;;  %v588_v11 = vpop.f32.mrf.mxu0  ;;  %v281_v8 = vld [vmem:[%s1891_s26 + $0x1a8] sm:$0xff] }
 0x165   : > { %1724 = vpow2.f32 %v1257_v9  ;;  %v589_v12 = vadd.f32 %v1940_v21, %v588_v11  ;;  %1612 = vmatmul.msk.f32.gmra.mxu3 %vm297_vm0, %v281_v8 }
 0x166   : > { %1439 = vst.msk [vmem:[%s2036_s16 + $0x48] sm:$0xff] %vm1429_vm2, %v1374_v10  ;;  %v1014_v13 = vpop.f32.mrf.mxu1  ;;  %v607_v10 = vadd.f32 %v1940_v21, %v606_v34 }
 0x167   : > { %v726_v14 = vmax.f32 %v589_v12, 0.0  ;;  %v1015_v15 = vadd.f32 %v2017_v27, %v1014_v13 }
 0x169   : > { %v1184_v17 = vsub.f32 0.0, %v1015_v15  ;;  %1650 = vmatmul.msk.f32.gmra.mxu1 %vm771_vm1, %v726_v14  ;;  %v618_v14 = vpop.f32.mrf.mxu3  ;;  %v732_v15 = vmax.f32 %v607_v10, 0.0 }
 0x16b   : > { %v1725_v18 = vpop.eup %1724  ;;  %v1259_v19 = vmul.f32 1.442695, %v1184_v17 }
 0x16c   : > { %v1375_v20 = vsub.f32 0.0, %v1725_v18  ;;  %v591_v22 = vpop.f32.mrf.mxu0  ;;  %v282_v18 = vld [vmem:[%s1891_s26 + $0x1b0] sm:$0xff] }
 0x16d   : > { %1726 = vpow2.f32 %v1259_v19  ;;  %v592_v23 = vadd.f32 %v1940_v21, %v591_v22  ;;  %1613 = vmatmul.msk.f32.gmra.mxu3 %vm297_vm0, %v282_v18 }
 0x16e   : > { %1440 = vst.msk [vmem:[%s2036_s16 + $0x50] sm:$0xff] %vm1429_vm2, %v1375_v20  ;;  %v1017_v24 = vpop.f32.mrf.mxu1  ;;  %v610_v20 = vadd.f32 %v1940_v21, %v609_v45 }
 0x16f   : > { %v727_v25 = vmax.f32 %v592_v23, 0.0  ;;  %v1018_v26 = vadd.f32 %v2017_v27, %v1017_v24 }
 0x171   : > { %v1185_v29 = vsub.f32 0.0, %v1018_v26  ;;  %1651 = vmatmul.msk.f32.gmra.mxu1 %vm771_vm1, %v727_v25  ;;  %v621_v25 = vpop.f32.mrf.mxu3  ;;  %v733_v26 = vmax.f32 %v610_v20, 0.0 }
 0x173   : > { %v1727_v30 = vpop.eup %1726  ;;  %v1261_v31 = vmul.f32 1.442695, %v1185_v29 }
 0x174   : > { %v1376_v32 = vsub.f32 0.0, %v1727_v30  ;;  %v594_v33 = vpop.f32.mrf.mxu0  ;;  %v283_v30 = vld [vmem:[%s1891_s26 + $0x1b8] sm:$0xff] }
 0x175   : > { %1728 = vpow2.f32 %v1261_v31  ;;  %v595_v35 = vadd.f32 %v1940_v21, %v594_v33  ;;  %1614 = vmatmul.msk.f32.gmra.mxu3 %vm297_vm0, %v283_v30 }
 0x176   : > { %1441 = vst.msk [vmem:[%s2036_s16 + $0x58] sm:$0xff] %vm1429_vm2, %v1376_v32  ;;  %v1020_v36 = vpop.f32.mrf.mxu1  ;;  %v613_v32 = vadd.f32 %v1940_v21, %v612_v56 }
 0x177   : > { %v728_v37 = vmax.f32 %v595_v35, 0.0  ;;  %v1021_v38 = vadd.f32 %v2017_v27, %v1020_v36 }
 0x179   : > { %v1186_v40 = vsub.f32 0.0, %v1021_v38  ;;  %1652 = vmatmul.msk.f32.gmra.mxu1 %vm771_vm1, %v728_v37  ;;  %v624_v36 = vpop.f32.mrf.mxu3  ;;  %v734_v37 = vmax.f32 %v613_v32, 0.0 }
 0x17a   : > { %v625_v8 = vadd.f32 %v1940_v21, %v624_v36 }
 0x17b   : > { %v1729_v41 = vpop.eup %1728  ;;  %v1263_v42 = vmul.f32 1.442695, %v1186_v40  ;;  %v284_v40 = vld [vmem:[%s1891_s26 + $0x1c0] sm:$0xff] }
 0x17c   : > { %v1377_v43 = vsub.f32 0.0, %v1729_v41  ;;  %v597_v44 = vpop.f32.mrf.mxu0 }
 0x17d   : > { %1730 = vpow2.f32 %v1263_v42  ;;  %v598_v46 = vadd.f32 %v1940_v21, %v597_v44  ;;  %v616_v42 = vadd.f32 %v1940_v21, %v615_v3  ;;  %1615 = vmatmul.msk.f32.gmra.mxu3 %vm297_vm0, %v284_v40 }
 0x17e   : > { %1442 = vst.msk [vmem:[%s2036_s16 + $0x60] sm:$0xff] %vm1429_vm2, %v1377_v43  ;;  %v1023_v47 = vpop.f32.mrf.mxu1 }
 0x17f   : > { %v729_v48 = vmax.f32 %v598_v46, 0.0  ;;  %v1024_v49 = vadd.f32 %v2017_v27, %v1023_v47  ;;  %v735_v47 = vmax.f32 %v616_v42, 0.0 }
 0x181   : > { %v1187_v51 = vsub.f32 0.0, %v1024_v49  ;;  %1653 = vmatmul.msk.f32.gmra.mxu1 %vm771_vm1, %v729_v48  ;;  %v627_v46 = vpop.f32.mrf.mxu3 }
 0x182   : > { %v628_v18 = vadd.f32 %v1940_v21, %v627_v46 }
 0x183   : > { %v1731_v52 = vpop.eup %1730  ;;  %v1265_v53 = vmul.f32 1.442695, %v1187_v51 }
 0x184   : > { %v1378_v54 = vsub.f32 0.0, %v1731_v52  ;;  %v600_v55 = vpop.f32.mrf.mxu0  ;;  %v619_v52 = vadd.f32 %v1940_v21, %v618_v14 }
 0x185   : > { %1732 = vpow2.f32 %v1265_v53  ;;  %v601_v57 = vadd.f32 %v1940_v21, %v600_v55  ;;  %1616 = vmatmul.msk.f32.gmra.mxu3 %vm297_vm0, %v285_v50 }
 0x186   : > { %1443 = vst.msk [vmem:[%s2036_s16 + $0x68] sm:$0xff] %vm1429_vm2, %v1378_v54  ;;  %v1026_v58 = vpop.f32.mrf.mxu1 }
 0x187   : > { %v730_v59 = vmax.f32 %v601_v57, 0.0  ;;  %v1027_v60 = vadd.f32 %v2017_v27, %v1026_v58  ;;  %v736_v57 = vmax.f32 %v619_v52, 0.0 }
 0x189   : > { %v1188_v62 = vsub.f32 0.0, %v1027_v60  ;;  %1654 = vmatmul.msk.f32.gmra.mxu1 %vm771_vm1, %v730_v59  ;;  %v630_v56 = vpop.f32.mrf.mxu3  ;;  %v286_v60 = vld [vmem:[%s1891_s26 + $0x1d0] sm:$0xff] }
 0x18a   : > { %v631_v30 = vadd.f32 %v1940_v21, %v630_v56 }
 0x18b   : > { %v1733_v63 = vpop.eup %1732  ;;  %v1267_v0 = vmul.f32 1.442695, %v1188_v62  ;;  %v622_v62 = vadd.f32 %v1940_v21, %v621_v25 }
 0x18c   : > { %v1379_v1 = vsub.f32 0.0, %v1733_v63  ;;  %v603_v2 = vpop.f32.mrf.mxu0 }
 0x18d   : > { %1734 = vpow2.f32 %v1267_v0  ;;  %v604_v4 = vadd.f32 %v1940_v21, %v603_v2  ;;  %1617 = vmatmul.msk.f32.gmra.mxu3 %vm297_vm0, %v286_v60  ;;  %v737_v3 = vmax.f32 %v622_v62, 0.0 }
 0x18e   : > { %1444 = vst.msk [vmem:[%s2036_s16 + $0x70] sm:$0xff] %vm1429_vm2, %v1379_v1  ;;  %v1029_v5 = vpop.f32.mrf.mxu1 }
 0x18f   : > { %v731_v6 = vmax.f32 %v604_v4, 0.0  ;;  %v1030_v7 = vadd.f32 %v2017_v27, %v1029_v5 }
 0x191   : > { %v1189_v9 = vsub.f32 0.0, %v1030_v7  ;;  %1655 = vmatmul.msk.f32.vlgmr.msra.gmra.mxu2 %vm771_vm1, %v731_v6  ;;  %v633_v2 = vpop.f32.mrf.mxu3  ;;  %v287_v6 = vld [vmem:[%s1891_s26 + $0x1d8] sm:$0xff] }
 0x192   : > { %v634_v40 = vadd.f32 %v1940_v21, %v633_v2 }
 0x193   : > { %v1735_v11 = vpop.eup %1734  ;;  %v1269_v12 = vmul.f32 1.442695, %v1189_v9 }
 0x194   : > { %v1380_v13 = vsub.f32 0.0, %v1735_v11 }
 0x195   : > { %1736 = vpow2.f32 %v1269_v12  ;;  %1618 = vmatmul.msk.f32.gmra.mxu3 %vm297_vm0, %v287_v6 }
 0x196   : > { %1445 = vst.msk [vmem:[%s2036_s16 + $0x78] sm:$0xff] %vm1429_vm2, %v1380_v13  ;;  %v1032_v16 = vpop.f32.mrf.mxu1  ;;  %v738_v13 = vmax.f32 %v625_v8, 0.0 }
 0x197   : > { %v1033_v17 = vadd.f32 %v2017_v27, %v1032_v16  ;;  %v288_v16 = vld [vmem:[%s1891_s26 + $0x1e0] sm:$0xff] }
 0x199   : > { %v1190_v19 = vsub.f32 0.0, %v1033_v17  ;;  %1656 = vmatmul.msk.f32.gmra.mxu2 %vm771_vm1, %v732_v15  ;;  %v636_v12 = vpop.f32.mrf.mxu3 }
 0x19a   : > { %v637_v50 = vadd.f32 %v1940_v21, %v636_v12 }
 0x19b   : > { %v1737_v22 = vpop.eup %1736  ;;  %v1271_v23 = vmul.f32 1.442695, %v1190_v19 }
 0x19c   : > { %v1381_v24 = vsub.f32 0.0, %v1737_v22 }
 0x19d   : > { %1738 = vpow2.f32 %v1271_v23  ;;  %1619 = vmatmul.msk.f32.gmra.mxu3 %vm297_vm0, %v288_v16 }
 0x19e   : > { %1446 = vst.msk [vmem:[%s2036_s16 + $0x80] sm:$0xff] %vm1429_vm2, %v1381_v24  ;;  %v1035_v28 = vpop.f32.mrf.mxu1  ;;  %v739_v24 = vmax.f32 %v628_v18, 0.0 }
 0x19f   : > { %v1036_v29 = vadd.f32 %v2017_v27, %v1035_v28  ;;  %v289_v28 = vld [vmem:[%s1891_s26 + $0x1e8] sm:$0xff] }
 0x1a1   : > { %v1191_v31 = vsub.f32 0.0, %v1036_v29  ;;  %1657 = vmatmul.msk.f32.gmra.mxu2 %vm771_vm1, %v733_v26  ;;  %v639_v23 = vpop.f32.mrf.mxu3 }
 0x1a3   : > { %v1739_v33 = vpop.eup %1738  ;;  %v1273_v34 = vmul.f32 1.442695, %v1191_v31 }
 0x1a4   : > { %v1382_v35 = vsub.f32 0.0, %v1739_v33 }
 0x1a5   : > { %1740 = vpow2.f32 %v1273_v34  ;;  %1620 = vmatmul.msk.f32.gmra.mxu3 %vm297_vm0, %v289_v28 }
 0x1a6   : > { %1447 = vst.msk [vmem:[%s2036_s16 + $0x88] sm:$0xff] %vm1429_vm2, %v1382_v35  ;;  %v1038_v38 = vpop.f32.mrf.mxu1  ;;  %v740_v35 = vmax.f32 %v631_v30, 0.0 }
 0x1a7   : > { %v1039_v39 = vadd.f32 %v2017_v27, %v1038_v38  ;;  %v290_v38 = vld [vmem:[%s1891_s26 + $0x1f0] sm:$0xff] }
 0x1a9   : > { %v1192_v41 = vsub.f32 0.0, %v1039_v39  ;;  %1658 = vmatmul.msk.f32.gmra.mxu2 %vm771_vm1, %v734_v37  ;;  %v642_v34 = vpop.f32.mrf.mxu3 }
 0x1ab   : > { %v1741_v43 = vpop.eup %1740  ;;  %v1275_v44 = vmul.f32 1.442695, %v1192_v41 }
 0x1ac   : > { %v1383_v45 = vsub.f32 0.0, %v1741_v43 }
 0x1ad   : > { %1742 = vpow2.f32 %v1275_v44  ;;  %1621 = vmatmul.msk.f32.gmra.mxu3 %vm297_vm0, %v290_v38 }
 0x1ae   : > { %1448 = vst.msk [vmem:[%s2036_s16 + $0x90] sm:$0xff] %vm1429_vm2, %v1383_v45  ;;  %v1041_v48 = vpop.f32.mrf.mxu1  ;;  %v741_v45 = vmax.f32 %v634_v40, 0.0 }
 0x1af   : > { %v1042_v49 = vadd.f32 %v2017_v27, %v1041_v48  ;;  %v291_v48 = vld [vmem:[%s1891_s26 + $0x1f8] sm:$0xff] }
 0x1b1   : > { %v1193_v51 = vsub.f32 0.0, %v1042_v49  ;;  %1659 = vmatmul.msk.f32.gmra.mxu2 %vm771_vm1, %v735_v47  ;;  %v645_v44 = vpop.f32.mrf.mxu3 }
 0x1b3   : > { %v1743_v53 = vpop.eup %1742  ;;  %v1277_v54 = vmul.f32 1.442695, %v1193_v51 }
 0x1b4   : > { %v1384_v55 = vsub.f32 0.0, %v1743_v53 }
 0x1b5   : > { %1744 = vpow2.f32 %v1277_v54  ;;  %1622 = vmatmul.msk.f32.gmra.mxu3 %vm297_vm0, %v291_v48 }
 0x1b6   : > { %1449 = vst.msk [vmem:[%s2036_s16 + $0x98] sm:$0xff] %vm1429_vm2, %v1384_v55  ;;  %v1044_v58 = vpop.f32.mrf.mxu1  ;;  %v742_v55 = vmax.f32 %v637_v50, 0.0 }
 0x1b7   : > { %v1045_v59 = vadd.f32 %v2017_v27, %v1044_v58 }
 0x1b9   : > { %v1194_v61 = vsub.f32 0.0, %v1045_v59  ;;  %1660 = vmatmul.msk.f32.gmra.mxu2 %vm771_vm1, %v736_v57  ;;  %v648_v54 = vpop.f32.mrf.mxu3  ;;  %v640_v59 = vadd.f32 %v1940_v21, %v639_v23 }
 0x1bb   : > { %v1745_v63 = vpop.eup %1744  ;;  %v1279_v0 = vmul.f32 1.442695, %v1194_v61 }
 0x1bc   : > { %v1385_v1 = vsub.f32 0.0, %v1745_v63 }
 0x1bd   : > { %1746 = vpow2.f32 %v1279_v0  ;;  %v743_v0 = vmax.f32 %v640_v59, 0.0 }
 0x1be   : > { %1450 = vst.msk [vmem:[%s2036_s16 + $0xa0] sm:$0xff] %vm1429_vm2, %v1385_v1  ;;  %v1047_v4 = vpop.f32.mrf.mxu1 }
 0x1bf   : > { %v1048_v5 = vadd.f32 %v2017_v27, %v1047_v4  ;;  %v643_v4 = vadd.f32 %v1940_v21, %v642_v34 }
 0x1c1   : > { %v1195_v7 = vsub.f32 0.0, %v1048_v5  ;;  %1661 = vmatmul.msk.f32.gmra.mxu2 %vm771_vm1, %v737_v3  ;;  %v651_v63 = vpop.f32.mrf.mxu3 }
 0x1c3   : > { %v1747_v9 = vpop.eup %1746  ;;  %v1281_v10 = vmul.f32 1.442695, %v1195_v7 }
 0x1c4   : > { %v1386_v11 = vsub.f32 0.0, %v1747_v9  ;;  %v744_v9 = vmax.f32 %v643_v4, 0.0 }
 0x1c5   : > { %1748 = vpow2.f32 %v1281_v10 }
 0x1c6   : > { %1451 = vst.msk [vmem:[%s2036_s16 + $0xa8] sm:$0xff] %vm1429_vm2, %v1386_v11  ;;  %v1050_v14 = vpop.f32.mrf.mxu1 }
 0x1c7   : > { %v1051_v15 = vadd.f32 %v2017_v27, %v1050_v14 }
 0x1c9   : > { %v1196_v17 = vsub.f32 0.0, %v1051_v15  ;;  %1662 = vmatmul.msk.f32.gmra.mxu2 %vm771_vm1, %v738_v13  ;;  %v654_v8 = vpop.f32.mrf.mxu3  ;;  %v2231_v13 = vld [vmem:[%s2385_s2] ss:$0 sm:$0xff] }
 0x1ca   : > { %v646_v21 = vadd.f32 %v2231_v13, %v645_v44  ;;  %v649_v23 = vadd.f32 %v2231_v13, %v648_v54 }
 0x1cb   : > { %v1749_v19 = vpop.eup %1748  ;;  %v1283_v20 = vmul.f32 1.442695, %v1196_v17 }
 0x1cc   : > { %v1387_v22 = vsub.f32 0.0, %v1749_v19  ;;  %v745_v18 = vmax.f32 %v646_v21, 0.0  ;;  %v746_v28 = vmax.f32 %v649_v23, 0.0 }
 0x1cd   : > { %1750 = vpow2.f32 %v1283_v20 }
 0x1ce   : > { %1452 = vst.msk [vmem:[%s2036_s16 + $0xb0] sm:$0xff] %vm1429_vm2, %v1387_v22  ;;  %v1053_v25 = vpop.f32.mrf.mxu1 }
 0x1cf   : > { %v1054_v26 = vadd.f32 %v2017_v27, %v1053_v25 }
 0x1d1   : > { %v1197_v29 = vsub.f32 0.0, %v1054_v26  ;;  %1663 = vmatmul.msk.f32.gmra.mxu2 %vm771_vm1, %v739_v24  ;;  %v657_v17 = vpop.f32.mrf.mxu3 }
 0x1d3   : > { %v1751_v31 = vpop.eup %1750  ;;  %v1285_v32 = vmul.f32 1.442695, %v1197_v29 }
 0x1d4   : > { %v1388_v33 = vsub.f32 0.0, %v1751_v31 }
 0x1d5   : > { %1752 = vpow2.f32 %v1285_v32 }
 0x1d6   : > { %1453 = vst.msk [vmem:[%s2036_s16 + $0xb8] sm:$0xff] %vm1429_vm2, %v1388_v33  ;;  %v1056_v36 = vpop.f32.mrf.mxu1  ;;  %v652_v33 = vadd.f32 %v2231_v13, %v651_v63 }
 0x1d7   : > { %v1057_v37 = vadd.f32 %v2017_v27, %v1056_v36 }
 0x1d9   : > { %v1198_v39 = vsub.f32 0.0, %v1057_v37  ;;  %1664 = vmatmul.msk.f32.gmra.mxu2 %vm771_vm1, %v740_v35  ;;  %v660_v30 = vpop.f32.mrf.mxu3  ;;  %v747_v37 = vmax.f32 %v652_v33, 0.0  ;;  %v2281_v33 = vld [vmem:[%s2387_s4] ss:$0 sm:$0xff] }
 0x1db   : > { %v1753_v41 = vpop.eup %1752  ;;  %v1287_v42 = vmul.f32 1.442695, %v1198_v39  ;;  %v655_v39 = vadd.f32 %v2231_v13, %v654_v8 }
 0x1dc   : > { %v1389_v43 = vsub.f32 0.0, %v1753_v41 }
 0x1dd   : > { %1754 = vpow2.f32 %v1287_v42 }
 0x1de   : > { %1454 = vst.msk [vmem:[%s2036_s16 + $0xc0] sm:$0xff] %vm1429_vm2, %v1389_v43  ;;  %v1059_v46 = vpop.f32.mrf.mxu1  ;;  %v748_v43 = vmax.f32 %v655_v39, 0.0 }
 0x1df   : > { %v1060_v47 = vadd.f32 %v2017_v27, %v1059_v46 }
 0x1e1   : > { %v1199_v49 = vsub.f32 0.0, %v1060_v47  ;;  %1665 = vmatmul.msk.f32.gmra.mxu2 %vm771_vm1, %v741_v45  ;;  %v663_v38 = vpop.f32.mrf.mxu3  ;;  %v658_v47 = vadd.f32 %v2231_v13, %v657_v17 }
 0x1e3   : > { %v1755_v51 = vpop.eup %1754  ;;  %v1289_v52 = vmul.f32 1.442695, %v1199_v49  ;;  %v749_v50 = vmax.f32 %v658_v47, 0.0 }
 0x1e4   : > { %v1390_v53 = vsub.f32 0.0, %v1755_v51 }
 0x1e5   : > { %1756 = vpow2.f32 %v1289_v52 }
 0x1e6   : > { %1455 = vst.msk [vmem:[%s2036_s16 + $0xc8] sm:$0xff] %vm1429_vm2, %v1390_v53  ;;  %v1062_v56 = vpop.f32.mrf.mxu1 }
 0x1e7   : > { %v1063_v57 = vadd.f32 %v2017_v27, %v1062_v56 }
 0x1e9   : > { %v1200_v58 = vsub.f32 0.0, %v1063_v57  ;;  %1666 = vmatmul.msk.f32.gmra.mxu2 %vm771_vm1, %v742_v55  ;;  %v666_v48 = vpop.f32.mrf.mxu3  ;;  %v661_v55 = vadd.f32 %v2231_v13, %v660_v30 }
 0x1eb   : > { %v1757_v60 = vpop.eup %1756  ;;  %v1291_v61 = vmul.f32 1.442695, %v1200_v58  ;;  %v750_v59 = vmax.f32 %v661_v55, 0.0 }
 0x1ec   : > { %v1391_v62 = vsub.f32 0.0, %v1757_v60 }
 0x1ed   : > { %1758 = vpow2.f32 %v1291_v61 }
 0x1ee   : > { %1456 = vst.msk [vmem:[%s2036_s16 + $0xd0] sm:$0xff] %vm1429_vm2, %v1391_v62  ;;  %v1065_v1 = vpop.f32.mrf.mxu1 }
 0x1ef   : > { %v1066_v2 = vadd.f32 %v2017_v27, %v1065_v1 }
 0x1f1   : > { %v1201_v3 = vsub.f32 0.0, %v1066_v2  ;;  %1667 = vmatmul.msk.f32.gmra.mxu2 %vm771_vm1, %v743_v0  ;;  %v669_v58 = vpop.f32.mrf.mxu3  ;;  %v664_v0 = vadd.f32 %v2231_v13, %v663_v38 }
 0x1f3   : > { %v1759_v5 = vpop.eup %1758  ;;  %v1293_v6 = vmul.f32 1.442695, %v1201_v3  ;;  %v751_v3 = vmax.f32 %v664_v0, 0.0 }
 0x1f4   : > { %v1392_v7 = vsub.f32 0.0, %v1759_v5 }
 0x1f5   : > { %1760 = vpow2.f32 %v1293_v6 }
 0x1f6   : > { %1457 = vst.msk [vmem:[%s2036_s16 + $0xd8] sm:$0xff] %vm1429_vm2, %v1392_v7  ;;  %v1068_v10 = vpop.f32.mrf.mxu1 }
 0x1f7   : > { %v1069_v11 = vadd.f32 %v2017_v27, %v1068_v10 }
 0x1f9   : > { %v1202_v12 = vsub.f32 0.0, %v1069_v11  ;;  %1668 = vmatmul.msk.f32.gmra.mxu2 %vm771_vm1, %v744_v9  ;;  %v672_v5 = vpop.f32.mrf.mxu3  ;;  %v667_v9 = vadd.f32 %v2231_v13, %v666_v48 }
 0x1fb   : > { %v1761_v14 = vpop.eup %1760  ;;  %v1295_v15 = vmul.f32 1.442695, %v1202_v12  ;;  %v752_v12 = vmax.f32 %v667_v9, 0.0 }
 0x1fc   : > { %v1393_v16 = vsub.f32 0.0, %v1761_v14 }
 0x1fd   : > { %1762 = vpow2.f32 %v1295_v15 }
 0x1fe   : > { %1458 = vst.msk [vmem:[%s2036_s16 + $0xe0] sm:$0xff] %vm1429_vm2, %v1393_v16  ;;  %v1071_v19 = vpop.f32.mrf.mxu1 }
 0x1ff   : > { %v1072_v20 = vadd.f32 %v2017_v27, %v1071_v19 }
 0x201   : > { %v1203_v22 = vsub.f32 0.0, %v1072_v20  ;;  %1669 = vmatmul.msk.f32.gmra.mxu2 %vm771_vm1, %v745_v18  ;;  %v675_v15 = vpop.f32.mrf.mxu3  ;;  %v670_v18 = vadd.f32 %v2231_v13, %v669_v58 }
 0x203   : > { %v1763_v24 = vpop.eup %1762  ;;  %v1297_v25 = vmul.f32 1.442695, %v1203_v22  ;;  %v753_v22 = vmax.f32 %v670_v18, 0.0 }
 0x204   : > { %v1394_v26 = vsub.f32 0.0, %v1763_v24 }
 0x205   : > { %1764 = vpow2.f32 %v1297_v25 }
 0x206   : > { %1459 = vst.msk [vmem:[%s2036_s16 + $0xe8] sm:$0xff] %vm1429_vm2, %v1394_v26  ;;  %v1074_v29 = vpop.f32.mrf.mxu1 }
 0x207   : > { %v1075_v31 = vadd.f32 %v2017_v27, %v1074_v29 }
 0x209   : > { %v1204_v32 = vsub.f32 0.0, %v1075_v31  ;;  %1670 = vmatmul.msk.f32.gmra.mxu2 %vm771_vm1, %v746_v28  ;;  %v673_v28 = vadd.f32 %v2231_v13, %v672_v5  ;;  %v678_v30 = vpop.f32.mrf.mxu3 }
 0x20b   : > { %v1765_v34 = vpop.eup %1764  ;;  %v1299_v35 = vmul.f32 1.442695, %v1204_v32  ;;  %v754_v32 = vmax.f32 %v673_v28, 0.0 }
 0x20c   : > { %v1395_v36 = vsub.f32 0.0, %v1765_v34 }
 0x20d   : > { %1766 = vpow2.f32 %v1299_v35 }
 0x20e   : > { %1460 = vst.msk [vmem:[%s2036_s16 + $0xf0] sm:$0xff] %vm1429_vm2, %v1395_v36 }
 0x211   : > { %1671 = vmatmul.msk.f32.gmra.mxu2 %vm771_vm1, %v747_v37  ;;  %v676_v37 = vadd.f32 %v2231_v13, %v675_v15 }
 0x213   : > { %v1767_v40 = vpop.eup %1766 }
 0x214   : > { %v1396_v41 = vsub.f32 0.0, %v1767_v40  ;;  %v1077_v42 = vpop.f32.mrf.mxu2  ;;  %v681_v40 = vpop.f32.mrf.mxu3 }
 0x215   : > { %v1078_v44 = vadd.f32 %v2017_v27, %v1077_v42  ;;  %v682_v55 = vadd.f32 %v2231_v13, %v681_v40 }
 0x216   : > { %1461 = vst.msk [vmem:[%s2036_s16 + $0xf8] sm:$0xff] %vm1429_vm2, %v1396_v41  ;;  %v755_v41 = vmax.f32 %v676_v37, 0.0 }
 0x217   : > { %v1205_v45 = vsub.f32 0.0, %v1078_v44  ;;  %v757_v58 = vmax.f32 %v682_v55, 0.0 }
 0x219   : > { %v1301_v46 = vmul.f32 1.442695, %v1205_v45  ;;  %1672 = vmatmul.msk.f32.gmra.mxu2 %vm771_vm1, %v748_v43 }
 0x21b   : > { %1768 = vpow2.f32 %v1301_v46  ;;  %v679_v46 = vadd.f32 %v2231_v13, %v678_v30 }
 0x21c   : > { %v1080_v49 = vpop.f32.mrf.mxu2 }
 0x21d   : > { %v1081_v51 = vadd.f32 %v2017_v27, %v1080_v49  ;;  %v756_v49 = vmax.f32 %v679_v46, 0.0 }
 0x21f   : > { %v1206_v52 = vsub.f32 0.0, %v1081_v51  ;;  %v684_v51 = vpop.f32.mrf.mxu3 }
 0x220   : > { %v685_v0 = vadd.f32 %v2231_v13, %v684_v51 }
 0x221   : > { %v1769_v53 = vpop.eup %1768  ;;  %v1303_v54 = vmul.f32 1.442695, %v1206_v52  ;;  %1673 = vmatmul.msk.f32.gmra.mxu2 %vm771_vm1, %v749_v50 }
 0x222   : > { %v1397_v56 = vsub.f32 0.0, %v1769_v53 }
 0x223   : > { %1770 = vpow2.f32 %v1303_v54 }
 0x224   : > { %1462 = vst.msk [vmem:[%s2036_s16 + $0x100] sm:$0xff] %vm1429_vm2, %v1397_v56  ;;  %v1083_v57 = vpop.f32.mrf.mxu2 }
 0x225   : > { %v1084_v60 = vadd.f32 %v2017_v27, %v1083_v57 }
 0x227   : > { %v1207_v61 = vsub.f32 0.0, %v1084_v60 }
 0x229   : > { %v1771_v62 = vpop.eup %1770  ;;  %v1305_v63 = vmul.f32 1.442695, %v1207_v61  ;;  %1674 = vmatmul.msk.f32.gmra.mxu2 %vm771_vm1, %v750_v59  ;;  %v687_v61 = vpop.f32.mrf.mxu3 }
 0x22a   : > { %v1398_v1 = vsub.f32 0.0, %v1771_v62 }
 0x22b   : > { %1772 = vpow2.f32 %v1305_v63 }
 0x22c   : > { %1463 = vst.msk [vmem:[%s2036_s16 + $0x108] sm:$0xff] %vm1429_vm2, %v1398_v1  ;;  %v1086_v2 = vpop.f32.mrf.mxu2 }
 0x22d   : > { %v1087_v4 = vadd.f32 %v2017_v27, %v1086_v2 }
 0x22f   : > { %v1208_v6 = vsub.f32 0.0, %v1087_v4 }
 0x231   : > { %v1773_v7 = vpop.eup %1772  ;;  %v1307_v8 = vmul.f32 1.442695, %v1208_v6  ;;  %1675 = vmatmul.msk.f32.gmra.mxu2 %vm771_vm1, %v751_v3  ;;  %v758_v3 = vmax.f32 %v685_v0, 0.0 }
 0x232   : > { %v1399_v10 = vsub.f32 0.0, %v1773_v7 }
 0x233   : > { %1774 = vpow2.f32 %v1307_v8  ;;  %v688_v8 = vadd.f32 %v2231_v13, %v687_v61 }
 0x234   : > { %1464 = vst.msk [vmem:[%s2036_s16 + $0x110] sm:$0xff] %vm1429_vm2, %v1399_v10  ;;  %v1089_v11 = vpop.f32.mrf.mxu2  ;;  %v690_v10 = vpop.f32.mrf.mxu3 }
 0x235   : > { %v1090_v21 = vadd.f32 %v2017_v27, %v1089_v11 }
 0x237   : > { %v1209_v14 = vsub.f32 0.0, %v1090_v21 }
 0x239   : > { %v1775_v16 = vpop.eup %1774  ;;  %v1309_v17 = vmul.f32 1.442695, %v1209_v14  ;;  %1676 = vmatmul.msk.f32.gmra.mxu2 %vm771_vm1, %v752_v12  ;;  %v759_v12 = vmax.f32 %v688_v8, 0.0 }
 0x23a   : > { %v1400_v19 = vsub.f32 0.0, %v1775_v16 }
 0x23b   : > { %1776 = vpow2.f32 %v1309_v17  ;;  %v691_v17 = vadd.f32 %v2231_v13, %v690_v10 }
 0x23c   : > { %1465 = vst.msk [vmem:[%s2036_s16 + $0x118] sm:$0xff] %vm1429_vm2, %v1400_v19  ;;  %v1092_v20 = vpop.f32.mrf.mxu2 }
 0x23d   : > { %v1093_v23 = vadd.f32 %v2017_v27, %v1092_v20  ;;  %v693_v20 = vpop.f32.mrf.mxu3 }
 0x23e   : > { %v694_v28 = vadd.f32 %v2231_v13, %v693_v20 }
 0x23f   : > { %v1210_v24 = vsub.f32 0.0, %v1093_v23 }
 0x241   : > { %v1777_v25 = vpop.eup %1776  ;;  %v1311_v26 = vmul.f32 1.442695, %v1210_v24  ;;  %1677 = vmatmul.msk.f32.gmra.mxu2 %vm771_vm1, %v753_v22  ;;  %v760_v22 = vmax.f32 %v691_v17, 0.0 }
 0x242   : > { %v1401_v29 = vsub.f32 0.0, %v1777_v25 }
 0x243   : > { %1778 = vpow2.f32 %v1311_v26 }
 0x244   : > { %1466 = vst.msk [vmem:[%s2036_s16 + $0x120] sm:$0xff] %vm1429_vm2, %v1401_v29  ;;  %v1095_v31 = vpop.f32.mrf.mxu2 }
 0x245   : > { %v1096_v27 = vadd.f32 %v2281_v33, %v1095_v31  ;;  %v761_v31 = vmax.f32 %v694_v28, 0.0 }
 0x247   : > { %v1211_v34 = vsub.f32 0.0, %v1096_v27  ;;  %v696_v27 = vpop.f32.mrf.mxu3 }
 0x248   : > { %v697_v37 = vadd.f32 %v2231_v13, %v696_v27 }
 0x249   : > { %v1779_v35 = vpop.eup %1778  ;;  %v1313_v36 = vmul.f32 1.442695, %v1211_v34  ;;  %1678 = vmatmul.msk.f32.gmra.mxu2 %vm771_vm1, %v754_v32 }
 0x24a   : > { %v1402_v38 = vsub.f32 0.0, %v1779_v35  ;;  %v762_v40 = vmax.f32 %v697_v37, 0.0 }
 0x24b   : > { %1780 = vpow2.f32 %v1313_v36 }
 0x24c   : > { %1467 = vst.msk [vmem:[%s2036_s16 + $0x128] sm:$0xff] %vm1429_vm2, %v1402_v38  ;;  %v1098_v39 = vpop.f32.mrf.mxu2 }
 0x24d   : > { %v1099_v42 = vadd.f32 %v2281_v33, %v1098_v39 }
 0x24f   : > { %v1212_v43 = vsub.f32 0.0, %v1099_v42 }
 0x251   : > { %v1781_v44 = vpop.eup %1780  ;;  %v1315_v45 = vmul.f32 1.442695, %v1212_v43  ;;  %1679 = vmatmul.msk.f32.gmra.mxu2 %vm771_vm1, %v755_v41 }
 0x252   : > { %v1403_v47 = vsub.f32 0.0, %v1781_v44 }
 0x253   : > { %1782 = vpow2.f32 %v1315_v45 }
 0x254   : > { %1468 = vst.msk [vmem:[%s2036_s16 + $0x130] sm:$0xff] %vm1429_vm2, %v1403_v47  ;;  %v1101_v48 = vpop.f32.mrf.mxu2 }
 0x255   : > { %v1102_v50 = vadd.f32 %v2281_v33, %v1101_v48 }
 0x257   : > { %v1213_v52 = vsub.f32 0.0, %v1102_v50 }
 0x259   : > { %v1783_v53 = vpop.eup %1782  ;;  %v1317_v54 = vmul.f32 1.442695, %v1213_v52  ;;  %1680 = vmatmul.msk.f32.gmra.mxu2 %vm771_vm1, %v756_v49 }
 0x25a   : > { %v1404_v56 = vsub.f32 0.0, %v1783_v53 }
 0x25b   : > { %1784 = vpow2.f32 %v1317_v54 }
 0x25c   : > { %1469 = vst.msk [vmem:[%s2036_s16 + $0x138] sm:$0xff] %vm1429_vm2, %v1404_v56  ;;  %v1104_v57 = vpop.f32.mrf.mxu2 }
 0x25d   : > { %v1105_v59 = vadd.f32 %v2281_v33, %v1104_v57 }
 0x25f   : > { %v1214_v60 = vsub.f32 0.0, %v1105_v59 }
 0x261   : > { %v1785_v62 = vpop.eup %1784  ;;  %v1319_v63 = vmul.f32 1.442695, %v1214_v60  ;;  %1681 = vmatmul.msk.f32.gmra.mxu2 %vm771_vm1, %v757_v58 }
 0x262   : > { %v1405_v1 = vsub.f32 0.0, %v1785_v62 }
 0x263   : > { %1786 = vpow2.f32 %v1319_v63 }
 0x264   : > { %1470 = vst.msk [vmem:[%s2036_s16 + $0x140] sm:$0xff] %vm1429_vm2, %v1405_v1  ;;  %v1107_v2 = vpop.f32.mrf.mxu2 }
 0x265   : > { %v1108_v4 = vadd.f32 %v2281_v33, %v1107_v2 }
 0x267   : > { %v1215_v5 = vsub.f32 0.0, %v1108_v4 }
 0x269   : > { %v1787_v6 = vpop.eup %1786  ;;  %v1321_v7 = vmul.f32 1.442695, %v1215_v5  ;;  %1682 = vmatmul.msk.f32.gmra.mxu2 %vm771_vm1, %v758_v3 }
 0x26a   : > { %v1406_v9 = vsub.f32 0.0, %v1787_v6 }
 0x26b   : > { %1788 = vpow2.f32 %v1321_v7 }
 0x26c   : > { %1471 = vst.msk [vmem:[%s2036_s16 + $0x148] sm:$0xff] %vm1429_vm2, %v1406_v9  ;;  %v1110_v11 = vpop.f32.mrf.mxu2 }
 0x26d   : > { %v1111_v21 = vadd.f32 %v2281_v33, %v1110_v11 }
 0x26f   : > { %v1216_v14 = vsub.f32 0.0, %v1111_v21 }
 0x271   : > { %v1789_v15 = vpop.eup %1788  ;;  %v1323_v16 = vmul.f32 1.442695, %v1216_v14  ;;  %1683 = vmatmul.msk.f32.gmra.mxu2 %vm771_vm1, %v759_v12 }
 0x272   : > { %v1407_v18 = vsub.f32 0.0, %v1789_v15 }
 0x273   : > { %1790 = vpow2.f32 %v1323_v16 }
 0x274   : > { %1472 = vst.msk [vmem:[%s2036_s16 + $0x150] sm:$0xff] %vm1429_vm2, %v1407_v18  ;;  %v1113_v19 = vpop.f32.mrf.mxu2 }
 0x275   : > { %v1114_v23 = vadd.f32 %v2281_v33, %v1113_v19 }
 0x277   : > { %v1217_v24 = vsub.f32 0.0, %v1114_v23 }
 0x279   : > { %v1791_v25 = vpop.eup %1790  ;;  %v1325_v26 = vmul.f32 1.442695, %v1217_v24  ;;  %1684 = vmatmul.msk.f32.gmra.mxu2 %vm771_vm1, %v760_v22 }
 0x27a   : > { %v1408_v29 = vsub.f32 0.0, %v1791_v25 }
 0x27b   : > { %1792 = vpow2.f32 %v1325_v26 }
 0x27c   : > { %1473 = vst.msk [vmem:[%s2036_s16 + $0x158] sm:$0xff] %vm1429_vm2, %v1408_v29  ;;  %v1116_v30 = vpop.f32.mrf.mxu2 }
 0x27d   : > { %v1117_v32 = vadd.f32 %v2281_v33, %v1116_v30 }
 0x27f   : > { %v1218_v34 = vsub.f32 0.0, %v1117_v32 }
 0x281   : > { %v1793_v35 = vpop.eup %1792  ;;  %v1327_v36 = vmul.f32 1.442695, %v1218_v34  ;;  %1685 = vmatmul.msk.f32.gmra.mxu2 %vm771_vm1, %v761_v31 }
 0x282   : > { %v1409_v38 = vsub.f32 0.0, %v1793_v35 }
 0x283   : > { %1794 = vpow2.f32 %v1327_v36 }
 0x284   : > { %1474 = vst.msk [vmem:[%s2036_s16 + $0x160] sm:$0xff] %vm1429_vm2, %v1409_v38  ;;  %v1119_v39 = vpop.f32.mrf.mxu2 }
 0x285   : > { %v1120_v41 = vadd.f32 %v2281_v33, %v1119_v39 }
 0x287   : > { %v1219_v42 = vsub.f32 0.0, %v1120_v41 }
 0x289   : > { %v1795_v43 = vpop.eup %1794  ;;  %v1329_v44 = vmul.f32 1.442695, %v1219_v42  ;;  %1686 = vmatmul.msk.f32.gmra.mxu2 %vm771_vm1, %v762_v40 }
 0x28a   : > { %v1410_v45 = vsub.f32 0.0, %v1795_v43 }
 0x28b   : > { %1796 = vpow2.f32 %v1329_v44 }
 0x28c   : > { %1475 = vst.msk [vmem:[%s2036_s16 + $0x168] sm:$0xff] %vm1429_vm2, %v1410_v45  ;;  %v1122_v13 = vpop.f32.mrf.mxu2 }
 0x28d   : > { %v1123_v46 = vadd.f32 %v2281_v33, %v1122_v13 }
 0x28f   : > { %v1220_v47 = vsub.f32 0.0, %v1123_v46 }
 0x291   : > { %v1797_v48 = vpop.eup %1796  ;;  %v1331_v49 = vmul.f32 1.442695, %v1220_v47 }
 0x292   : > { %v1411_v50 = vsub.f32 0.0, %v1797_v48 }
 0x293   : > { %1798 = vpow2.f32 %v1331_v49 }
 0x294   : > { %1476 = vst.msk [vmem:[%s2036_s16 + $0x170] sm:$0xff] %vm1429_vm2, %v1411_v50  ;;  %v1125_v51 = vpop.f32.mrf.mxu2 }
 0x295   : > { %v1126_v52 = vadd.f32 %v2281_v33, %v1125_v51 }
 0x297   : > { %v1221_v53 = vsub.f32 0.0, %v1126_v52 }
 0x299   : > { %v1799_v54 = vpop.eup %1798  ;;  %v1333_v55 = vmul.f32 1.442695, %v1221_v53 }
 0x29a   : > { %v1412_v56 = vsub.f32 0.0, %v1799_v54 }
 0x29b   : > { %1800 = vpow2.f32 %v1333_v55 }
 0x29c   : > { %1477 = vst.msk [vmem:[%s2036_s16 + $0x178] sm:$0xff] %vm1429_vm2, %v1412_v56  ;;  %v1128_v57 = vpop.f32.mrf.mxu2 }
 0x29d   : > { %v1129_v58 = vadd.f32 %v2281_v33, %v1128_v57 }
 0x29f   : > { %v1222_v59 = vsub.f32 0.0, %v1129_v58 }
 0x2a1   : > { %v1801_v60 = vpop.eup %1800  ;;  %v1335_v61 = vmul.f32 1.442695, %v1222_v59 }
 0x2a2   : > { %v1413_v62 = vsub.f32 0.0, %v1801_v60 }
 0x2a3   : > { %1802 = vpow2.f32 %v1335_v61 }
 0x2a4   : > { %1478 = vst.msk [vmem:[%s2036_s16 + $0x180] sm:$0xff] %vm1429_vm2, %v1413_v62  ;;  %v1131_v63 = vpop.f32.mrf.mxu2 }
 0x2a5   : > { %v1132_v0 = vadd.f32 %v2281_v33, %v1131_v63 }
 0x2a7   : > { %v1223_v1 = vsub.f32 0.0, %v1132_v0 }
 0x2a9   : > { %v1803_v2 = vpop.eup %1802  ;;  %v1337_v3 = vmul.f32 1.442695, %v1223_v1 }
 0x2aa   : > { %v1414_v4 = vsub.f32 0.0, %v1803_v2 }
 0x2ab   : > { %1804 = vpow2.f32 %v1337_v3 }
 0x2ac   : > { %1479 = vst.msk [vmem:[%s2036_s16 + $0x188] sm:$0xff] %vm1429_vm2, %v1414_v4  ;;  %v1134_v5 = vpop.f32.mrf.mxu2 }
 0x2ad   : > { %v1135_v6 = vadd.f32 %v2281_v33, %v1134_v5 }
 0x2af   : > { %v1224_v7 = vsub.f32 0.0, %v1135_v6 }
 0x2b1   : > { %v1805_v8 = vpop.eup %1804  ;;  %v1339_v9 = vmul.f32 1.442695, %v1224_v7 }
 0x2b2   : > { %v1415_v10 = vsub.f32 0.0, %v1805_v8 }
 0x2b3   : > { %1806 = vpow2.f32 %v1339_v9 }
 0x2b4   : > { %1480 = vst.msk [vmem:[%s2036_s16 + $0x190] sm:$0xff] %vm1429_vm2, %v1415_v10  ;;  %v1137_v11 = vpop.f32.mrf.mxu2 }
 0x2b5   : > { %v1138_v12 = vadd.f32 %v2281_v33, %v1137_v11 }
 0x2b7   : > { %v1225_v21 = vsub.f32 0.0, %v1138_v12 }
 0x2b9   : > { %v1807_v14 = vpop.eup %1806  ;;  %v1341_v15 = vmul.f32 1.442695, %v1225_v21 }
 0x2ba   : > { %v1416_v16 = vsub.f32 0.0, %v1807_v14 }
 0x2bb   : > { %1808 = vpow2.f32 %v1341_v15 }
 0x2bc   : > { %1481 = vst.msk [vmem:[%s2036_s16 + $0x198] sm:$0xff] %vm1429_vm2, %v1416_v16  ;;  %v1140_v17 = vpop.f32.mrf.mxu2 }
 0x2bd   : > { %v1141_v18 = vadd.f32 %v2281_v33, %v1140_v17 }
 0x2bf   : > { %v1226_v19 = vsub.f32 0.0, %v1141_v18 }
 0x2c1   : > { %v1809_v20 = vpop.eup %1808  ;;  %v1343_v22 = vmul.f32 1.442695, %v1226_v19 }
 0x2c2   : > { %v1417_v23 = vsub.f32 0.0, %v1809_v20 }
 0x2c3   : > { %1810 = vpow2.f32 %v1343_v22 }
 0x2c4   : > { %1482 = vst.msk [vmem:[%s2036_s16 + $0x1a0] sm:$0xff] %vm1429_vm2, %v1417_v23  ;;  %v1143_v24 = vpop.f32.mrf.mxu2 }
 0x2c5   : > { %v1144_v25 = vadd.f32 %v2281_v33, %v1143_v24 }
 0x2c7   : > { %v1227_v26 = vsub.f32 0.0, %v1144_v25 }
 0x2c9   : > { %v1811_v28 = vpop.eup %1810  ;;  %v1345_v29 = vmul.f32 1.442695, %v1227_v26 }
 0x2ca   : > { %v1418_v30 = vsub.f32 0.0, %v1811_v28 }
 0x2cb   : > { %1812 = vpow2.f32 %v1345_v29 }
 0x2cc   : > { %1483 = vst.msk [vmem:[%s2036_s16 + $0x1a8] sm:$0xff] %vm1429_vm2, %v1418_v30  ;;  %v1146_v31 = vpop.f32.mrf.mxu2 }
 0x2cd   : > { %v1147_v32 = vadd.f32 %v2281_v33, %v1146_v31 }
 0x2cf   : > { %v1228_v27 = vsub.f32 0.0, %v1147_v32 }
 0x2d1   : > { %v1813_v34 = vpop.eup %1812  ;;  %v1347_v35 = vmul.f32 1.442695, %v1228_v27 }
 0x2d2   : > { %v1419_v36 = vsub.f32 0.0, %v1813_v34 }
 0x2d3   : > { %1814 = vpow2.f32 %v1347_v35 }
 0x2d4   : > { %1484 = vst.msk [vmem:[%s2036_s16 + $0x1b0] sm:$0xff] %vm1429_vm2, %v1419_v36  ;;  %v1149_v37 = vpop.f32.mrf.mxu2 }
 0x2d5   : > { %v1150_v38 = vadd.f32 %v2281_v33, %v1149_v37 }
 0x2d7   : > { %v1229_v39 = vsub.f32 0.0, %v1150_v38 }
 0x2d9   : > { %v1815_v40 = vpop.eup %1814  ;;  %v1349_v41 = vmul.f32 1.442695, %v1229_v39 }
 0x2da   : > { %v1420_v42 = vsub.f32 0.0, %v1815_v40 }
 0x2db   : > { %1816 = vpow2.f32 %v1349_v41 }
 0x2dc   : > { %1485 = vst.msk [vmem:[%s2036_s16 + $0x1b8] sm:$0xff] %vm1429_vm2, %v1420_v42  ;;  %v1152_v43 = vpop.f32.mrf.mxu2 }
 0x2dd   : > { %v1153_v44 = vadd.f32 %v2281_v33, %v1152_v43 }
 0x2df   : > { %v1230_v45 = vsub.f32 0.0, %v1153_v44 }
 0x2e1   : > { %v1817_v13 = vpop.eup %1816  ;;  %v1351_v46 = vmul.f32 1.442695, %v1230_v45 }
 0x2e2   : > { %v1421_v47 = vsub.f32 0.0, %v1817_v13 }
 0x2e3   : > { %1818 = vpow2.f32 %v1351_v46 }
 0x2e4   : > { %1486 = vst.msk [vmem:[%s2036_s16 + $0x1c0] sm:$0xff] %vm1429_vm2, %v1421_v47  ;;  %v1155_v48 = vpop.f32.mrf.mxu2 }
 0x2e5   : > { %v1156_v49 = vadd.f32 %v2281_v33, %v1155_v48 }
 0x2e7   : > { %v1231_v50 = vsub.f32 0.0, %v1156_v49 }
 0x2e9   : > { %v1819_v51 = vpop.eup %1818  ;;  %v1353_v52 = vmul.f32 1.442695, %v1231_v50 }
 0x2ea   : > { %v1422_v53 = vsub.f32 0.0, %v1819_v51 }
 0x2eb   : > { %1820 = vpow2.f32 %v1353_v52 }
 0x2ec   : > { %1487 = vst.msk [vmem:[%s2036_s16 + $0x1c8] sm:$0xff] %vm1429_vm2, %v1422_v53  ;;  %v1158_v54 = vpop.f32.mrf.mxu2 }
 0x2ed   : > { %v1159_v55 = vadd.f32 %v2281_v33, %v1158_v54 }
 0x2ef   : > { %v1232_v56 = vsub.f32 0.0, %v1159_v55 }
 0x2f1   : > { %v1821_v57 = vpop.eup %1820  ;;  %v1355_v58 = vmul.f32 1.442695, %v1232_v56 }
 0x2f2   : > { %v1423_v59 = vsub.f32 0.0, %v1821_v57 }
 0x2f3   : > { %1822 = vpow2.f32 %v1355_v58 }
 0x2f4   : > { %1488 = vst.msk [vmem:[%s2036_s16 + $0x1d0] sm:$0xff] %vm1429_vm2, %v1423_v59  ;;  %v1161_v60 = vpop.f32.mrf.mxu2 }
 0x2f5   : > { %v1162_v61 = vadd.f32 %v2281_v33, %v1161_v60 }
 0x2f7   : > { %v1233_v62 = vsub.f32 0.0, %v1162_v61 }
 0x2f9   : > { %v1823_v63 = vpop.eup %1822  ;;  %v1357_v0 = vmul.f32 1.442695, %v1233_v62 }
 0x2fa   : > { %v1424_v1 = vsub.f32 0.0, %v1823_v63 }
 0x2fb   : > { %1824 = vpow2.f32 %v1357_v0 }
 0x2fc   : > { %1489 = vst.msk [vmem:[%s2036_s16 + $0x1d8] sm:$0xff] %vm1429_vm2, %v1424_v1  ;;  %v1164_v2 = vpop.f32.mrf.mxu2 }
 0x2fd   : > { %v1165_v3 = vadd.f32 %v2281_v33, %v1164_v2 }
 0x2ff   : > { %v1234_v4 = vsub.f32 0.0, %v1165_v3 }
 0x301   : > { %v1825_v5 = vpop.eup %1824  ;;  %v1359_v6 = vmul.f32 1.442695, %v1234_v4 }
 0x302   : > { %v1425_v7 = vsub.f32 0.0, %v1825_v5 }
 0x303   : > { %1826 = vpow2.f32 %v1359_v6 }
 0x304   : > { %1490 = vst.msk [vmem:[%s2036_s16 + $0x1e0] sm:$0xff] %vm1429_vm2, %v1425_v7  ;;  %v1167_v8 = vpop.f32.mrf.mxu2 }
 0x305   : > { %v1168_v9 = vadd.f32 %v2281_v33, %v1167_v8 }
 0x307   : > { %v1235_v10 = vsub.f32 0.0, %v1168_v9 }
 0x309   : > { %v1827_v11 = vpop.eup %1826  ;;  %v1361_v12 = vmul.f32 1.442695, %v1235_v10 }
 0x30a   : > { %v1426_v21 = vsub.f32 0.0, %v1827_v11 }
 0x30b   : > { %1828 = vpow2.f32 %v1361_v12 }
 0x30c   : > { %1491 = vst.msk [vmem:[%s2036_s16 + $0x1e8] sm:$0xff] %vm1429_vm2, %v1426_v21  ;;  %v1170_v14 = vpop.f32.mrf.mxu2 }
 0x30d   : > { %v1171_v15 = vadd.f32 %v2281_v33, %v1170_v14 }
 0x30f   : > { %v1236_v16 = vsub.f32 0.0, %v1171_v15 }
 0x311   : > { %v1829_v17 = vpop.eup %1828  ;;  %v1363_v18 = vmul.f32 1.442695, %v1236_v16 }
 0x312   : > { %v1427_v19 = vsub.f32 0.0, %v1829_v17 }
 0x313   : > { %1830 = vpow2.f32 %v1363_v18 }
 0x314   : > { %1492 = vst.msk [vmem:[%s2036_s16 + $0x1f0] sm:$0xff] %vm1429_vm2, %v1427_v19 }
 0x319   : > { %v1831_v20 = vpop.eup %1830 }
 0x31a   : > { %v1428_v22 = vsub.f32 0.0, %v1831_v20 }
 0x31c   : > { %1493 = vst.msk [vmem:[%s2036_s16 + $0x1f8] sm:$0xff] %vm1429_vm2, %v1428_v22 }
 0x31d PF: > { %s15_s18 = sadd.s32 1, %s1840_s18  }
 0x31e   : > { %p12_p4 = scmp.ge.s32.totalorder %s15_s18, 4  }
 0x320   :  { %14 = sbr.rel (!%p12_p4) target bundleno = 1 (0x1), region = 70 }

</bundles_post_ra>
